<compile_context>
chip_gen: v7x
topology: tpu7x:2x2x1
jax: 0.10.0
libtpu: 0.0.40
codegen_flags: <defaults>
</compile_context>

<pallas_src>
import numpy as np
import jax
import jax.numpy as jnp
from jax.experimental import pallas as pl
from jax.experimental.pallas import tpu as pltpu

_ACT_DTYPE = jnp.bfloat16     # matmul operands / activation storage (f32 accumulation)


def _round_up(x, m):
    return (x + m - 1) // m * m


# ----------------------------------------------------------------------------
# Generation-aware VMEM budgets
# ----------------------------------------------------------------------------
_BUDGETS = None


def _budgets():
    """Returns (vmem_limit_bytes, res3 working-set budget)."""
    global _BUDGETS
    if _BUDGETS is None:
        cap = None
        try:
            cap = getattr(pltpu.get_tpu_info(), "vmem_capacity_bytes", None)
        except Exception:
            cap = None
        if not cap:
            cap = 64 * 1024 * 1024        # conservative (v7x-sized) fallback
        limit = max(32 * 1024 * 1024,
                    min(int(cap) * 3 // 4, 100 * 1024 * 1024))
        _BUDGETS = (limit, limit // 2)
    return _BUDGETS


def _const_spec(shape):
    """Grid-invariant (weight/bias) BlockSpec; single-buffered where supported."""
    idx = (0,) * len(shape)
    try:
        return pl.BlockSpec(shape, lambda *_: idx, pipeline_mode=pl.Buffered(1))
    except Exception:                     # pipeline_mode/Buffered not available
        return pl.BlockSpec(shape, lambda *_: idx)


# ----------------------------------------------------------------------------
# Kernel 1: fused chain of 1x1x1 resnet blocks (+ optional trailing 1x1 conv)
# ----------------------------------------------------------------------------
def _make_chain_kernel(res_flags, has_final):
    def kernel(*refs):
        x_ref, o_ref = refs[0], refs[-1]
        prm = refs[1:-1]
        pi = 0
        cur = x_ref[...].astype(jnp.float32)
        for has_res in res_flags:
            w1, b1, w2, b2 = prm[pi:pi + 4]
            pi += 4
            lhs = cur.astype(_ACT_DTYPE)
            if has_res:                       # 1x1x1 residual conv
                wr, br = prm[pi:pi + 2]
                pi += 2
                res = jnp.dot(lhs, wr[...],
                              preferred_element_type=jnp.float32) + br[...]
            else:                             # identity residual: plain add
                res = cur
            h = jnp.dot(lhs, w1[...], preferred_element_type=jnp.float32) + b1[...]
            h = h * jax.nn.sigmoid(h)         # SiLU in f32
            h = jnp.dot(h.astype(_ACT_DTYPE), w2[...],
                        preferred_element_type=jnp.float32) + b2[...]
            h = h * jax.nn.sigmoid(h)
            cur = h + res
        if has_final:                         # trailing plain 1x1x1 conv
            wf, bf = prm[pi], prm[pi + 1]
            cur = jnp.dot(cur.astype(_ACT_DTYPE), wf[...],
                          preferred_element_type=jnp.float32) + bf[...]
        o_ref[...] = cur.astype(o_ref.dtype)

    return kernel


def pallas_chain(rows, blocks, final=None, out_dtype=None):
    """Apply a sequence of fused 1x1x1 resnet blocks (+ optional 1x1 conv)."""
    n, c0 = rows.shape
    if out_dtype is None:
        out_dtype = _ACT_DTYPE
    cout = final["w"].shape[-1] if final is not None else blocks[-1]["w2"].shape[-1]
    vmem_limit, _ = _budgets()

    tm_target = 1024 if vmem_limit >= 64 * 1024 * 1024 else 512
    tm = min(tm_target, _round_up(n, 8))
    if tm >= n and n > 8:                 # keep >= 2 grid steps (v7x: 2 TCs/chip)
        tm = _round_up((n + 1) // 2, 8)
    n_pad = _round_up(n, tm)
    x_in = rows if n_pad == n else jnp.pad(rows, ((0, n_pad - n), (0, 0)))

    args = [x_in]
    in_specs = [pl.BlockSpec((tm, c0), lambda i: (i, 0))]
    res_flags = []

    def add_param(a):
        args.append(a)
        in_specs.append(_const_spec(a.shape))

    for blk in blocks:
        has_res = "wr" in blk
        res_flags.append(has_res)
        for nm in ("w1", "b1", "w2", "b2"):
            add_param(blk[nm])
        if has_res:
            add_param(blk["wr"])
            add_param(blk["br"])
    if final is not None:
        add_param(final["w"])
        add_param(final["b"])

    out = pl.pallas_call(
        _make_chain_kernel(tuple(res_flags), final is not None),
        out_shape=jax.ShapeDtypeStruct((n_pad, cout), out_dtype),
        grid_spec=pltpu.PrefetchScalarGridSpec(
            num_scalar_prefetch=0,
            grid=(n_pad // tm,),
            in_specs=in_specs,
            out_specs=pl.BlockSpec((tm, cout), lambda i: (i, 0)),
        ),
        compiler_params=pltpu.CompilerParams(
            dimension_semantics=("parallel",),
            vmem_limit_bytes=vmem_limit),
    )(*args)
    return out[:n] if n_pad != n else out


# ----------------------------------------------------------------------------
# Kernel 2: EquivariantResnetBlock_31_up — 3x3x3 circular conv + SiLU + 1x1
# conv + SiLU + residual.  Input is a plain non-overlapping depth tile plus a
# 2-row depth halo; D/H/W wrap halos are assembled in VMEM; the 27 taps are
# computed as 9 matmuls with the 3 W-shifts packed along the K axis; the f32
# accumulator is loop-carried (no scratch read-modify-write).
# ----------------------------------------------------------------------------
def _make_res3_kernel(td, hh, ww, cin, cout, has_res):
    n = td * hh * ww

    def kernel(*refs):
        if has_res:
            (x_ref, halo_ref, w1_ref, b1_ref, w2_ref, b2_ref,
             wr_ref, br_ref, o_ref) = refs
        else:
            x_ref, halo_ref, w1_ref, b1_ref, w2_ref, b2_ref, o_ref = refs
            wr_ref = br_ref = None

        xs = x_ref[...]                                   # (td, hh, ww, cin)
        hp = halo_ref[...]                                # (2, hh, ww, cin)
        # depth halo (wrap comes pre-gathered): (td+2, hh, ww, cin)
        xs = jnp.concatenate([hp[0:1], xs, hp[1:2]], axis=0)
        # height wrap halo from the tile itself: (td+2, hh+2, ww, cin)
        xs = jnp.concatenate([xs[:, hh - 1:hh], xs, xs[:, 0:1]], axis=1)
        # width wrap: pack the 3 W-shifts along channels -> (td+2, hh+2, ww, 3*cin)
        cat = jnp.concatenate(
            [jnp.roll(xs, 1, axis=2), xs, jnp.roll(xs, -1, axis=2)], axis=-1)

        acc = None
        t = 0
        for dz in range(3):
            for dy in range(3):               # alignment-preserving major-dim slices
                op = cat[dz:dz + td, dy:dy + hh].reshape(n, 3 * cin)
                contrib = jnp.dot(op, w1_ref[t],
                                  preferred_element_type=jnp.float32)
                acc = contrib if acc is None else acc + contrib
                t += 1

        h = acc + b1_ref[...]
        h = h * jax.nn.sigmoid(h)
        h = jnp.dot(h.astype(_ACT_DTYPE), w2_ref[...],
                    preferred_element_type=jnp.float32) + b2_ref[...]
        h = h * jax.nn.sigmoid(h)

        x_center = xs[1:1 + td, 1:1 + hh].reshape(n, cin)     # unshifted input
        if has_res:
            res = jnp.dot(x_center, wr_ref[...],
                          preferred_element_type=jnp.float32) + br_ref[...]
        else:
            res = x_center.astype(jnp.float32)
        o_ref[...] = (h + res).astype(o_ref.dtype)

    return kernel


def pallas_res3(x, halo, p, td):
    b, d, hh, ww, cin = x.shape
    n_t = d // td
    n = td * hh * ww
    cout = p["w2"].shape[-1]
    has_res = "wr" in p
    vmem_limit, _ = _budgets()

    args = [x, halo, p["w1"], p["b1"], p["w2"], p["b2"]]
    in_specs = [
        pl.BlockSpec((None, td, hh, ww, cin), lambda ib, it: (ib, it, 0, 0, 0)),
        pl.BlockSpec((None, None, 2, hh, ww, cin),
                     lambda ib, it: (ib, it, 0, 0, 0, 0)),
        _const_spec(p["w1"].shape), _const_spec(p["b1"].shape),
        _const_spec(p["w2"].shape), _const_spec(p["b2"].shape),
    ]
    if has_res:
        args += [p["wr"], p["br"]]
        in_specs += [_const_spec(p["wr"].shape), _const_spec(p["br"].shape)]

    return pl.pallas_call(
        _make_res3_kernel(td, hh, ww, cin, cout, has_res),
        out_shape=jax.ShapeDtypeStruct((b, n_t, n, cout), _ACT_DTYPE),
        grid_spec=pltpu.PrefetchScalarGridSpec(
            num_scalar_prefetch=0,
            grid=(b, n_t),
            in_specs=in_specs,
            out_specs=pl.BlockSpec((None, None, n, cout),
                                   lambda ib, it: (ib, it, 0, 0)),
        ),
        compiler_params=pltpu.CompilerParams(
            dimension_semantics=("parallel", "parallel"),
            vmem_limit_bytes=vmem_limit),
    )(*args)


def _pick_td(b, d, hh, ww, cin, cout, budget):
    """Largest depth tile (dividing d) whose VMEM working set fits the budget."""
    item = jnp.dtype(_ACT_DTYPE).itemsize
    wbytes = (27 * cin * cout + cout * cout + cin * cout) * item + 16 * cout

    def need(td):
        slab = (td + 2) * (hh + 2) * ww * cin * item
        n = td * hh * ww
        return (wbytes
                + 2 * td * hh * ww * cin * item     # input block (double-buffered)
                + 6 * slab                           # halo'd slab + rolls + 3x cat
                + n * 3 * cin * item                 # per-tap matmul operand
                + n * cout * (4 + 4 + 4)             # acc / h / res in f32
                + 2 * n * cout * item)               # output block (double-buffered)

    divisors = [t for t in range(1, d + 1) if d % t == 0]
    fitting = [t for t in divisors if need(t) <= budget] or [1]
    td = max(fitting)
    if b * (d // td) < 2:                            # >= 2 grid steps for 2-TC parts
        smaller = [t for t in fitting if t < d]
        if smaller:
            td = max(smaller)
    return td


# ----------------------------------------------------------------------------
# Glue (plain XLA): tiny depth-halo gather, nearest upsample
# ----------------------------------------------------------------------------
def _apply_res3(x, p):
    b, d, hh, ww, c = x.shape
    cout = p["w2"].shape[-1]
    _, budget = _budgets()
    td = _pick_td(b, d, hh, ww, c, cout, budget)
    n_t = d // td
    starts = np.arange(n_t) * td
    prev_idx = np.asarray((starts - 1) % d, np.int32)
    next_idx = np.asarray((starts + td) % d, np.int32)
    # (b, n_t, 2, hh, ww, c): only 2 depth rows per tile leave HBM twice.
    halo = jnp.stack([x[:, prev_idx], x[:, next_idx]], axis=2)
    out = pallas_res3(x, halo, p, td)                 # (b, n_t, td*hh*ww, cout)
    return out.reshape(b, d, hh, ww, cout)


def _apply_chain(x, blocks, final=None, out_dtype=None):
    b, d, hh, ww, c = x.shape
    rows = x.reshape(b * d * hh * ww, c)
    out = pallas_chain(rows, blocks, final=final, out_dtype=out_dtype)
    return out.reshape(b, d, hh, ww, out.shape[-1])


def _nearest_up2(x):
    # single broadcast + reshape: one HBM materialization (not 3x jnp.repeat)
    b, d, hh, ww, c = x.shape
    y = jnp.broadcast_to(x[:, :, None, :, None, :, None, :],
                         (b, d, 2, hh, 2, ww, 2, c))
    return y.reshape(b, 2 * d, 2 * hh, 2 * ww, c)


# ----------------------------------------------------------------------------
# Parameter construction (deterministic init, weight standardization)
# ----------------------------------------------------------------------------
def _weight_std(w, eps=1e-5):
    mean = jnp.mean(w, axis=(1, 2, 3, 4), keepdims=True)
    var = jnp.var(w, axis=(1, 2, 3, 4), keepdims=True)
    return (w - mean) * jax.lax.rsqrt(var + eps)


def _conv_init(key, cout, cin, k):
    kw, kb = jax.random.split(key)
    fan_in = cin * k ** 3
    w = jax.random.normal(kw, (cout, cin, k, k, k), jnp.float32) / jnp.sqrt(fan_in)
    b = 0.01 * jax.random.normal(kb, (cout,), jnp.float32)
    return w, b


def _as_mat1(w):  # (cout, cin, 1, 1, 1) -> (cin, cout)
    return jnp.transpose(w[:, :, 0, 0, 0], (1, 0))


def _make_res_block(key, cin, cout, ksize, use_weight_std=True):
    k1, k2, k3 = jax.random.split(key, 3)
    w1, b1 = _conv_init(k1, cout, cin, ksize)
    w2, b2 = _conv_init(k2, cout, cout, 1)
    if use_weight_std:
        w1 = _weight_std(w1)
        w2 = _weight_std(w2)
    p = dict(ksize=ksize)
    if ksize == 3:
        # (cout,cin,3,3,3) -> (kz,ky,kx,cin,cout) -> (9, 3*cin, cout);
        # tap index = dz*3+dy, contraction index = dx*cin + ci (matches the
        # in-kernel [x-1 | x | x+1] channel packing).
        p["w1"] = jnp.transpose(w1, (2, 3, 4, 1, 0)).reshape(
            9, 3 * cin, cout).astype(_ACT_DTYPE)
    else:
        p["w1"] = _as_mat1(w1).astype(_ACT_DTYPE)
    p["b1"] = b1.reshape(1, cout)                     # biases kept in f32
    p["w2"] = _as_mat1(w2).astype(_ACT_DTYPE)
    p["b2"] = b2.reshape(1, cout)
    if cin != cout:
        wr, br = _conv_init(k3, cout, cin, 1)
        p["wr"] = _as_mat1(wr).astype(_ACT_DTYPE)
        p["br"] = br.reshape(1, cout)
    # identity residual (cin == cout): no weights; kernel does a plain add.
    return p


def build_decoder_params(key, dim, dim_mults, channels, z_channels):
    dims = [dim * m for m in dim_mults]
    in_out = list(zip(dims[:-1], dims[1:]))
    keys = iter(jax.random.split(key, 8 + 3 * max(1, len(in_out))))

    params = {}
    params["mid"] = [
        _make_res_block(next(keys), z_channels, dims[-1], 1),
        _make_res_block(next(keys), dims[-1], dims[-1], 1),
        _make_res_block(next(keys), dims[-1], dims[-1], 1),
        _make_res_block(next(keys), dims[-1], dims[-1], 1),
    ]
    params["ups"] = []
    for dim_in, dim_out in reversed(in_out):
        wu, bu = _conv_init(next(keys), dim_out, dim_out, 1)   # Upsample_conv1
        params["ups"].append(("up", dict(w=_as_mat1(wu).astype(_ACT_DTYPE),
                                         b=bu.reshape(1, dim_out))))
        params["ups"].append(("res", _make_res_block(next(keys), dim_out, dim_in, 3)))
        params["ups"].append(("res", _make_res_block(next(keys), dim_in, dim_in, 3)))
    out_dim = dims[0]
    params["final_block"] = _make_res_block(next(keys), out_dim, out_dim, 1)

    # final_conv: plain nn.Conv3d k=1; output kept channel-minor and UNPADDED
    # (dense HBM writes; no 128-lane write amplification).
    wf, bf = _conv_init(next(keys), channels, out_dim, 1)
    params["final_conv"] = dict(w=_as_mat1(wf).astype(_ACT_DTYPE),
                                b=bf.reshape(1, channels))
    return params


# ----------------------------------------------------------------------------
# Decoder forward
# ----------------------------------------------------------------------------
def decoder_forward(z_ncdhw, params):
    x = jnp.transpose(z_ncdhw, (0, 2, 3, 4, 1)).astype(_ACT_DTYPE)  # NCDHW->NDHWC
    ups = params["ups"]

    # mid_block_1..4 fused into one kernel; the first Upsample_conv1's 1x1 conv
    # is folded in as a trailing matmul (1x1 conv commutes with nearest x2 up).
    first_up = ups[0][1] if (ups and ups[0][0] == "up") else None
    x = _apply_chain(x, params["mid"], final=first_up)
    start = 0
    if first_up is not None:
        x = _nearest_up2(x)
        start = 1

    for kind, p in ups[start:]:
        if kind == "up":
            # TODO(synk): optionally fold this 1x1 conv into the next res3 weights.
            x = _apply_chain(x, [], final=p)     # conv BEFORE upsample (commutes)
            x = _nearest_up2(x)
        else:
            x = _apply_res3(x, p)

    # final_block_1 + final_conv fused; f32, channel-minor, unpadded output
    x = _apply_chain(x, [params["final_block"]], final=params["final_conv"],
                     out_dtype=jnp.float32)
    # TODO(synk): the NDHWC->NCDHW transpose could be folded into the out
    # BlockSpec of the final kernel; it is a single small (3-channel) XLA pass.
    return jnp.transpose(x, (0, 4, 1, 2, 3))     # NDHWC -> NCDHW


if __name__ == "__main__":
    key = jax.random.PRNGKey(0)
    kp, kz = jax.random.split(key)

    # small config: dim=4, dim_mults=(1,2) -> dims=[4,8]; one upsample stage;
    # z_channels != dims[-1] so the residual-conv path is exercised too.
    dim, dim_mults, channels, z_channels = 4, (1, 2), 3, 16
    params = build_decoder_params(kp, dim, dim_mults, channels, z_channels)

    # latent z: (B=2, z_channels=16, 4, 4, 4)  -> output (2, 3, 8, 8, 8)
    z = jax.random.normal(kz, (2, z_channels, 4, 4, 4), jnp.float32)

    out = decoder_forward(z, params)
    out = jax.block_until_ready(out)
    assert out.shape == (2, channels, 8, 8, 8), out.shape
    assert bool(jnp.all(jnp.isfinite(out)))
    print("KERNEL_OK")
</pallas_src>

<mosaic_0001>
module attributes {stable_mosaic.version = 11 : i64} {
  func.func @kernel(%arg0: i32, %arg1: memref<64x16xbf16, #tpu.memory_space<vmem>>, %arg2: memref<16x8xbf16, #tpu.memory_space<vmem>>, %arg3: memref<1x8xf32, #tpu.memory_space<vmem>>, %arg4: memref<8x8xbf16, #tpu.memory_space<vmem>>, %arg5: memref<1x8xf32, #tpu.memory_space<vmem>>, %arg6: memref<16x8xbf16, #tpu.memory_space<vmem>>, %arg7: memref<1x8xf32, #tpu.memory_space<vmem>>, %arg8: memref<8x8xbf16, #tpu.memory_space<vmem>>, %arg9: memref<1x8xf32, #tpu.memory_space<vmem>>, %arg10: memref<8x8xbf16, #tpu.memory_space<vmem>>, %arg11: memref<1x8xf32, #tpu.memory_space<vmem>>, %arg12: memref<8x8xbf16, #tpu.memory_space<vmem>>, %arg13: memref<1x8xf32, #tpu.memory_space<vmem>>, %arg14: memref<8x8xbf16, #tpu.memory_space<vmem>>, %arg15: memref<1x8xf32, #tpu.memory_space<vmem>>, %arg16: memref<8x8xbf16, #tpu.memory_space<vmem>>, %arg17: memref<1x8xf32, #tpu.memory_space<vmem>>, %arg18: memref<8x8xbf16, #tpu.memory_space<vmem>>, %arg19: memref<1x8xf32, #tpu.memory_space<vmem>>, %arg20: memref<8x8xbf16, #tpu.memory_space<vmem>>, %arg21: memref<1x8xf32, #tpu.memory_space<vmem>>, %arg22: memref<64x8xbf16, #tpu.memory_space<vmem>>) attributes {dimension_semantics = [#tpu.dimension_semantics<parallel>], iteration_bounds = array<i64: 2>, scalar_prefetch = 0 : i64, scratch_operands = 0 : i64, tpu.core_type = #tpu.core_type<tc>, window_params = [{transform_indices = @transform_0, window_bounds = array<i64: 64, 16>}, {pipeline_mode = #tpu.pipeline_mode<synchronous>, transform_indices = @transform_1, window_bounds = array<i64: 16, 8>}, {pipeline_mode = #tpu.pipeline_mode<synchronous>, transform_indices = @transform_2, window_bounds = array<i64: 1, 8>}, {pipeline_mode = #tpu.pipeline_mode<synchronous>, transform_indices = @transform_3, window_bounds = array<i64: 8, 8>}, {pipeline_mode = #tpu.pipeline_mode<synchronous>, transform_indices = @transform_4, window_bounds = array<i64: 1, 8>}, {pipeline_mode = #tpu.pipeline_mode<synchronous>, transform_indices = @transform_5, window_bounds = array<i64: 16, 8>}, {pipeline_mode = #tpu.pipeline_mode<synchronous>, transform_indices = @transform_6, window_bounds = array<i64: 1, 8>}, {pipeline_mode = #tpu.pipeline_mode<synchronous>, transform_indices = @transform_7, window_bounds = array<i64: 8, 8>}, {pipeline_mode = #tpu.pipeline_mode<synchronous>, transform_indices = @transform_8, window_bounds = array<i64: 1, 8>}, {pipeline_mode = #tpu.pipeline_mode<synchronous>, transform_indices = @transform_9, window_bounds = array<i64: 8, 8>}, {pipeline_mode = #tpu.pipeline_mode<synchronous>, transform_indices = @transform_10, window_bounds = array<i64: 1, 8>}, {pipeline_mode = #tpu.pipeline_mode<synchronous>, transform_indices = @transform_11, window_bounds = array<i64: 8, 8>}, {pipeline_mode = #tpu.pipeline_mode<synchronous>, transform_indices = @transform_12, window_bounds = array<i64: 1, 8>}, {pipeline_mode = #tpu.pipeline_mode<synchronous>, transform_indices = @transform_13, window_bounds = array<i64: 8, 8>}, {pipeline_mode = #tpu.pipeline_mode<synchronous>, transform_indices = @transform_14, window_bounds = array<i64: 1, 8>}, {pipeline_mode = #tpu.pipeline_mode<synchronous>, transform_indices = @transform_15, window_bounds = array<i64: 8, 8>}, {pipeline_mode = #tpu.pipeline_mode<synchronous>, transform_indices = @transform_16, window_bounds = array<i64: 1, 8>}, {pipeline_mode = #tpu.pipeline_mode<synchronous>, transform_indices = @transform_17, window_bounds = array<i64: 8, 8>}, {pipeline_mode = #tpu.pipeline_mode<synchronous>, transform_indices = @transform_18, window_bounds = array<i64: 1, 8>}, {pipeline_mode = #tpu.pipeline_mode<synchronous>, transform_indices = @transform_19, window_bounds = array<i64: 8, 8>}, {pipeline_mode = #tpu.pipeline_mode<synchronous>, transform_indices = @transform_20, window_bounds = array<i64: 1, 8>}, {transform_indices = @transform_21, window_bounds = array<i64: 64, 8>}]} {
    %c0 = arith.constant 0 : index
    %c0_0 = arith.constant 0 : index
    %0 = vector.load %arg1[%c0, %c0_0] : memref<64x16xbf16, #tpu.memory_space<vmem>>, vector<64x16xbf16>
    %1 = arith.extf %0 : vector<64x16xbf16> to vector<64x16xf32>
    %2 = arith.truncf %1 : vector<64x16xf32> to vector<64x16xbf16>
    %c0_1 = arith.constant 0 : index
    %c0_2 = arith.constant 0 : index
    %3 = vector.load %arg6[%c0_1, %c0_2] : memref<16x8xbf16, #tpu.memory_space<vmem>>, vector<16x8xbf16>
    %cst = arith.constant dense<0.000000e+00> : vector<64x8xf32>
    %4 = tpu.matmul %2, %3, %cst {dimension_numbers = #tpu.dot_dimension_numbers<[1], [0], [0], [1], [0, 0, 1, 1], [], []>} : vector<64x16xbf16>, vector<16x8xbf16>, vector<64x8xf32> -> vector<64x8xf32>
    %c0_3 = arith.constant 0 : index
    %c0_4 = arith.constant 0 : index
    %5 = vector.load %arg7[%c0_3, %c0_4] : memref<1x8xf32, #tpu.memory_space<vmem>>, vector<1x8xf32>
    %6 = vector.broadcast %5 : vector<1x8xf32> to vector<64x8xf32>
    %7 = arith.addf %4, %6 : vector<64x8xf32>
    %c0_5 = arith.constant 0 : index
    %c0_6 = arith.constant 0 : index
    %8 = vector.load %arg2[%c0_5, %c0_6] : memref<16x8xbf16, #tpu.memory_space<vmem>>, vector<16x8xbf16>
    %cst_7 = arith.constant dense<0.000000e+00> : vector<64x8xf32>
    %9 = tpu.matmul %2, %8, %cst_7 {dimension_numbers = #tpu.dot_dimension_numbers<[1], [0], [0], [1], [0, 0, 1, 1], [], []>} : vector<64x16xbf16>, vector<16x8xbf16>, vector<64x8xf32> -> vector<64x8xf32>
    %c0_8 = arith.constant 0 : index
    %c0_9 = arith.constant 0 : index
    %10 = vector.load %arg3[%c0_8, %c0_9] : memref<1x8xf32, #tpu.memory_space<vmem>>, vector<1x8xf32>
    %11 = vector.broadcast %10 : vector<1x8xf32> to vector<64x8xf32>
    %12 = arith.addf %9, %11 : vector<64x8xf32>
    %13 = arith.negf %12 : vector<64x8xf32>
    %14 = math.exp %13 : vector<64x8xf32>
    %cst_10 = arith.constant 1.000000e+00 : f32
    %15 = vector.broadcast %cst_10 : f32 to vector<64x8xf32>
    %16 = arith.addf %15, %14 : vector<64x8xf32>
    %17 = arith.divf %15, %16 : vector<64x8xf32>
    %18 = arith.mulf %12, %17 : vector<64x8xf32>
    %19 = arith.truncf %18 : vector<64x8xf32> to vector<64x8xbf16>
    %c0_11 = arith.constant 0 : index
    %c0_12 = arith.constant 0 : index
    %20 = vector.load %arg4[%c0_11, %c0_12] : memref<8x8xbf16, #tpu.memory_space<vmem>>, vector<8x8xbf16>
    %cst_13 = arith.constant dense<0.000000e+00> : vector<64x8xf32>
    %21 = tpu.matmul %19, %20, %cst_13 {dimension_numbers = #tpu.dot_dimension_numbers<[1], [0], [0], [1], [0, 0, 1, 1], [], []>} : vector<64x8xbf16>, vector<8x8xbf16>, vector<64x8xf32> -> vector<64x8xf32>
    %c0_14 = arith.constant 0 : index
    %c0_15 = arith.constant 0 : index
    %22 = vector.load %arg5[%c0_14, %c0_15] : memref<1x8xf32, #tpu.memory_space<vmem>>, vector<1x8xf32>
    %23 = vector.broadcast %22 : vector<1x8xf32> to vector<64x8xf32>
    %24 = arith.addf %21, %23 : vector<64x8xf32>
    %25 = arith.negf %24 : vector<64x8xf32>
    %26 = math.exp %25 : vector<64x8xf32>
    %cst_16 = arith.constant 1.000000e+00 : f32
    %27 = vector.broadcast %cst_16 : f32 to vector<64x8xf32>
    %28 = arith.addf %27, %26 : vector<64x8xf32>
    %29 = arith.divf %27, %28 : vector<64x8xf32>
    %30 = arith.mulf %24, %29 : vector<64x8xf32>
    %31 = arith.addf %30, %7 : vector<64x8xf32>
    %32 = arith.truncf %31 : vector<64x8xf32> to vector<64x8xbf16>
    %c0_17 = arith.constant 0 : index
    %c0_18 = arith.constant 0 : index
    %33 = vector.load %arg8[%c0_17, %c0_18] : memref<8x8xbf16, #tpu.memory_space<vmem>>, vector<8x8xbf16>
    %cst_19 = arith.constant dense<0.000000e+00> : vector<64x8xf32>
    %34 = tpu.matmul %32, %33, %cst_19 {dimension_numbers = #tpu.dot_dimension_numbers<[1], [0], [0], [1], [0, 0, 1, 1], [], []>} : vector<64x8xbf16>, vector<8x8xbf16>, vector<64x8xf32> -> vector<64x8xf32>
    %c0_20 = arith.constant 0 : index
    %c0_21 = arith.constant 0 : index
    %35 = vector.load %arg9[%c0_20, %c0_21] : memref<1x8xf32, #tpu.memory_space<vmem>>, vector<1x8xf32>
    %36 = vector.broadcast %35 : vector<1x8xf32> to vector<64x8xf32>
    %37 = arith.addf %34, %36 : vector<64x8xf32>
    %38 = arith.negf %37 : vector<64x8xf32>
    %39 = math.exp %38 : vector<64x8xf32>
    %cst_22 = arith.constant 1.000000e+00 : f32
    %40 = vector.broadcast %cst_22 : f32 to vector<64x8xf32>
    %41 = arith.addf %40, %39 : vector<64x8xf32>
    %42 = arith.divf %40, %41 : vector<64x8xf32>
    %43 = arith.mulf %37, %42 : vector<64x8xf32>
    %44 = arith.truncf %43 : vector<64x8xf32> to vector<64x8xbf16>
    %c0_23 = arith.constant 0 : index
    %c0_24 = arith.constant 0 : index
    %45 = vector.load %arg10[%c0_23, %c0_24] : memref<8x8xbf16, #tpu.memory_space<vmem>>, vector<8x8xbf16>
    %cst_25 = arith.constant dense<0.000000e+00> : vector<64x8xf32>
    %46 = tpu.matmul %44, %45, %cst_25 {dimension_numbers = #tpu.dot_dimension_numbers<[1], [0], [0], [1], [0, 0, 1, 1], [], []>} : vector<64x8xbf16>, vector<8x8xbf16>, vector<64x8xf32> -> vector<64x8xf32>
    %c0_26 = arith.constant 0 : index
    %c0_27 = arith.constant 0 : index
    %47 = vector.load %arg11[%c0_26, %c0_27] : memref<1x8xf32, #tpu.memory_space<vmem>>, vector<1x8xf32>
    %48 = vector.broadcast %47 : vector<1x8xf32> to vector<64x8xf32>
    %49 = arith.addf %46, %48 : vector<64x8xf32>
    %50 = arith.negf %49 : vector<64x8xf32>
    %51 = math.exp %50 : vector<64x8xf32>
    %cst_28 = arith.constant 1.000000e+00 : f32
    %52 = vector.broadcast %cst_28 : f32 to vector<64x8xf32>
    %53 = arith.addf %52, %51 : vector<64x8xf32>
    %54 = arith.divf %52, %53 : vector<64x8xf32>
    %55 = arith.mulf %49, %54 : vector<64x8xf32>
    %56 = arith.addf %55, %31 : vector<64x8xf32>
    %57 = arith.truncf %56 : vector<64x8xf32> to vector<64x8xbf16>
    %c0_29 = arith.constant 0 : index
    %c0_30 = arith.constant 0 : index
    %58 = vector.load %arg12[%c0_29, %c0_30] : memref<8x8xbf16, #tpu.memory_space<vmem>>, vector<8x8xbf16>
    %cst_31 = arith.constant dense<0.000000e+00> : vector<64x8xf32>
    %59 = tpu.matmul %57, %58, %cst_31 {dimension_numbers = #tpu.dot_dimension_numbers<[1], [0], [0], [1], [0, 0, 1, 1], [], []>} : vector<64x8xbf16>, vector<8x8xbf16>, vector<64x8xf32> -> vector<64x8xf32>
    %c0_32 = arith.constant 0 : index
    %c0_33 = arith.constant 0 : index
    %60 = vector.load %arg13[%c0_32, %c0_33] : memref<1x8xf32, #tpu.memory_space<vmem>>, vector<1x8xf32>
    %61 = vector.broadcast %60 : vector<1x8xf32> to vector<64x8xf32>
    %62 = arith.addf %59, %61 : vector<64x8xf32>
    %63 = arith.negf %62 : vector<64x8xf32>
    %64 = math.exp %63 : vector<64x8xf32>
    %cst_34 = arith.constant 1.000000e+00 : f32
    %65 = vector.broadcast %cst_34 : f32 to vector<64x8xf32>
    %66 = arith.addf %65, %64 : vector<64x8xf32>
    %67 = arith.divf %65, %66 : vector<64x8xf32>
    %68 = arith.mulf %62, %67 : vector<64x8xf32>
    %69 = arith.truncf %68 : vector<64x8xf32> to vector<64x8xbf16>
    %c0_35 = arith.constant 0 : index
    %c0_36 = arith.constant 0 : index
    %70 = vector.load %arg14[%c0_35, %c0_36] : memref<8x8xbf16, #tpu.memory_space<vmem>>, vector<8x8xbf16>
    %cst_37 = arith.constant dense<0.000000e+00> : vector<64x8xf32>
    %71 = tpu.matmul %69, %70, %cst_37 {dimension_numbers = #tpu.dot_dimension_numbers<[1], [0], [0], [1], [0, 0, 1, 1], [], []>} : vector<64x8xbf16>, vector<8x8xbf16>, vector<64x8xf32> -> vector<64x8xf32>
    %c0_38 = arith.constant 0 : index
    %c0_39 = arith.constant 0 : index
    %72 = vector.load %arg15[%c0_38, %c0_39] : memref<1x8xf32, #tpu.memory_space<vmem>>, vector<1x8xf32>
    %73 = vector.broadcast %72 : vector<1x8xf32> to vector<64x8xf32>
    %74 = arith.addf %71, %73 : vector<64x8xf32>
    %75 = arith.negf %74 : vector<64x8xf32>
    %76 = math.exp %75 : vector<64x8xf32>
    %cst_40 = arith.constant 1.000000e+00 : f32
    %77 = vector.broadcast %cst_40 : f32 to vector<64x8xf32>
    %78 = arith.addf %77, %76 : vector<64x8xf32>
    %79 = arith.divf %77, %78 : vector<64x8xf32>
    %80 = arith.mulf %74, %79 : vector<64x8xf32>
    %81 = arith.addf %80, %56 : vector<64x8xf32>
    %82 = arith.truncf %81 : vector<64x8xf32> to vector<64x8xbf16>
    %c0_41 = arith.constant 0 : index
    %c0_42 = arith.constant 0 : index
    %83 = vector.load %arg16[%c0_41, %c0_42] : memref<8x8xbf16, #tpu.memory_space<vmem>>, vector<8x8xbf16>
    %cst_43 = arith.constant dense<0.000000e+00> : vector<64x8xf32>
    %84 = tpu.matmul %82, %83, %cst_43 {dimension_numbers = #tpu.dot_dimension_numbers<[1], [0], [0], [1], [0, 0, 1, 1], [], []>} : vector<64x8xbf16>, vector<8x8xbf16>, vector<64x8xf32> -> vector<64x8xf32>
    %c0_44 = arith.constant 0 : index
    %c0_45 = arith.constant 0 : index
    %85 = vector.load %arg17[%c0_44, %c0_45] : memref<1x8xf32, #tpu.memory_space<vmem>>, vector<1x8xf32>
    %86 = vector.broadcast %85 : vector<1x8xf32> to vector<64x8xf32>
    %87 = arith.addf %84, %86 : vector<64x8xf32>
    %88 = arith.negf %87 : vector<64x8xf32>
    %89 = math.exp %88 : vector<64x8xf32>
    %cst_46 = arith.constant 1.000000e+00 : f32
    %90 = vector.broadcast %cst_46 : f32 to vector<64x8xf32>
    %91 = arith.addf %90, %89 : vector<64x8xf32>
    %92 = arith.divf %90, %91 : vector<64x8xf32>
    %93 = arith.mulf %87, %92 : vector<64x8xf32>
    %94 = arith.truncf %93 : vector<64x8xf32> to vector<64x8xbf16>
    %c0_47 = arith.constant 0 : index
    %c0_48 = arith.constant 0 : index
    %95 = vector.load %arg18[%c0_47, %c0_48] : memref<8x8xbf16, #tpu.memory_space<vmem>>, vector<8x8xbf16>
    %cst_49 = arith.constant dense<0.000000e+00> : vector<64x8xf32>
    %96 = tpu.matmul %94, %95, %cst_49 {dimension_numbers = #tpu.dot_dimension_numbers<[1], [0], [0], [1], [0, 0, 1, 1], [], []>} : vector<64x8xbf16>, vector<8x8xbf16>, vector<64x8xf32> -> vector<64x8xf32>
    %c0_50 = arith.constant 0 : index
    %c0_51 = arith.constant 0 : index
    %97 = vector.load %arg19[%c0_50, %c0_51] : memref<1x8xf32, #tpu.memory_space<vmem>>, vector<1x8xf32>
    %98 = vector.broadcast %97 : vector<1x8xf32> to vector<64x8xf32>
    %99 = arith.addf %96, %98 : vector<64x8xf32>
    %100 = arith.negf %99 : vector<64x8xf32>
    %101 = math.exp %100 : vector<64x8xf32>
    %cst_52 = arith.constant 1.000000e+00 : f32
    %102 = vector.broadcast %cst_52 : f32 to vector<64x8xf32>
    %103 = arith.addf %102, %101 : vector<64x8xf32>
    %104 = arith.divf %102, %103 : vector<64x8xf32>
    %105 = arith.mulf %99, %104 : vector<64x8xf32>
    %106 = arith.addf %105, %81 : vector<64x8xf32>
    %107 = arith.truncf %106 : vector<64x8xf32> to vector<64x8xbf16>
    %c0_53 = arith.constant 0 : index
    %c0_54 = arith.constant 0 : index
    %108 = vector.load %arg20[%c0_53, %c0_54] : memref<8x8xbf16, #tpu.memory_space<vmem>>, vector<8x8xbf16>
    %cst_55 = arith.constant dense<0.000000e+00> : vector<64x8xf32>
    %109 = tpu.matmul %107, %108, %cst_55 {dimension_numbers = #tpu.dot_dimension_numbers<[1], [0], [0], [1], [0, 0, 1, 1], [], []>} : vector<64x8xbf16>, vector<8x8xbf16>, vector<64x8xf32> -> vector<64x8xf32>
    %c0_56 = arith.constant 0 : index
    %c0_57 = arith.constant 0 : index
    %110 = vector.load %arg21[%c0_56, %c0_57] : memref<1x8xf32, #tpu.memory_space<vmem>>, vector<1x8xf32>
    %111 = vector.broadcast %110 : vector<1x8xf32> to vector<64x8xf32>
    %112 = arith.addf %109, %111 : vector<64x8xf32>
    %113 = arith.truncf %112 : vector<64x8xf32> to vector<64x8xbf16>
    %c0_58 = arith.constant 0 : index
    %c0_59 = arith.constant 0 : index
    %114 = vector.load %arg22[%c0_58, %c0_59] : memref<64x8xbf16, #tpu.memory_space<vmem>>, vector<64x8xbf16>
    tpu.vector_store %arg22[%c0_58, %c0_59], %113 {strides = array<i32>} : memref<64x8xbf16, #tpu.memory_space<vmem>>, vector<64x8xbf16>,
    return
  }
  func.func @transform_0(%arg0: i32) -> (i32, i32) {
    %c0_i32 = arith.constant 0 : i32
    %c0_i32_0 = arith.constant 0 : i32
    return %arg0, %c0_i32 : i32, i32
  }
  func.func @transform_1(%arg0: i32) -> (i32, i32) {
    %c0_i32 = arith.constant 0 : i32
    %c0_i32_0 = arith.constant 0 : i32
    %c0_i32_1 = arith.constant 0 : i32
    return %c0_i32, %c0_i32_0 : i32, i32
  }
  func.func @transform_2(%arg0: i32) -> (i32, i32) {
    %c0_i32 = arith.constant 0 : i32
    %c0_i32_0 = arith.constant 0 : i32
    %c0_i32_1 = arith.constant 0 : i32
    return %c0_i32, %c0_i32_0 : i32, i32
  }
  func.func @transform_3(%arg0: i32) -> (i32, i32) {
    %c0_i32 = arith.constant 0 : i32
    %c0_i32_0 = arith.constant 0 : i32
    %c0_i32_1 = arith.constant 0 : i32
    return %c0_i32, %c0_i32_0 : i32, i32
  }
  func.func @transform_4(%arg0: i32) -> (i32, i32) {
    %c0_i32 = arith.constant 0 : i32
    %c0_i32_0 = arith.constant 0 : i32
    %c0_i32_1 = arith.constant 0 : i32
    return %c0_i32, %c0_i32_0 : i32, i32
  }
  func.func @transform_5(%arg0: i32) -> (i32, i32) {
    %c0_i32 = arith.constant 0 : i32
    %c0_i32_0 = arith.constant 0 : i32
    %c0_i32_1 = arith.constant 0 : i32
    return %c0_i32, %c0_i32_0 : i32, i32
  }
  func.func @transform_6(%arg0: i32) -> (i32, i32) {
    %c0_i32 = arith.constant 0 : i32
    %c0_i32_0 = arith.constant 0 : i32
    %c0_i32_1 = arith.constant 0 : i32
    return %c0_i32, %c0_i32_0 : i32, i32
  }
  func.func @transform_7(%arg0: i32) -> (i32, i32) {
    %c0_i32 = arith.constant 0 : i32
    %c0_i32_0 = arith.constant 0 : i32
    %c0_i32_1 = arith.constant 0 : i32
    return %c0_i32, %c0_i32_0 : i32, i32
  }
  func.func @transform_8(%arg0: i32) -> (i32, i32) {
    %c0_i32 = arith.constant 0 : i32
    %c0_i32_0 = arith.constant 0 : i32
    %c0_i32_1 = arith.constant 0 : i32
    return %c0_i32, %c0_i32_0 : i32, i32
  }
  func.func @transform_9(%arg0: i32) -> (i32, i32) {
    %c0_i32 = arith.constant 0 : i32
    %c0_i32_0 = arith.constant 0 : i32
    %c0_i32_1 = arith.constant 0 : i32
    return %c0_i32, %c0_i32_0 : i32, i32
  }
  func.func @transform_10(%arg0: i32) -> (i32, i32) {
    %c0_i32 = arith.constant 0 : i32
    %c0_i32_0 = arith.constant 0 : i32
    %c0_i32_1 = arith.constant 0 : i32
    return %c0_i32, %c0_i32_0 : i32, i32
  }
  func.func @transform_11(%arg0: i32) -> (i32, i32) {
    %c0_i32 = arith.constant 0 : i32
    %c0_i32_0 = arith.constant 0 : i32
    %c0_i32_1 = arith.constant 0 : i32
    return %c0_i32, %c0_i32_0 : i32, i32
  }
  func.func @transform_12(%arg0: i32) -> (i32, i32) {
    %c0_i32 = arith.constant 0 : i32
    %c0_i32_0 = arith.constant 0 : i32
    %c0_i32_1 = arith.constant 0 : i32
    return %c0_i32, %c0_i32_0 : i32, i32
  }
  func.func @transform_13(%arg0: i32) -> (i32, i32) {
    %c0_i32 = arith.constant 0 : i32
    %c0_i32_0 = arith.constant 0 : i32
    %c0_i32_1 = arith.constant 0 : i32
    return %c0_i32, %c0_i32_0 : i32, i32
  }
  func.func @transform_14(%arg0: i32) -> (i32, i32) {
    %c0_i32 = arith.constant 0 : i32
    %c0_i32_0 = arith.constant 0 : i32
    %c0_i32_1 = arith.constant 0 : i32
    return %c0_i32, %c0_i32_0 : i32, i32
  }
  func.func @transform_15(%arg0: i32) -> (i32, i32) {
    %c0_i32 = arith.constant 0 : i32
    %c0_i32_0 = arith.constant 0 : i32
    %c0_i32_1 = arith.constant 0 : i32
    return %c0_i32, %c0_i32_0 : i32, i32
  }
  func.func @transform_16(%arg0: i32) -> (i32, i32) {
    %c0_i32 = arith.constant 0 : i32
    %c0_i32_0 = arith.constant 0 : i32
    %c0_i32_1 = arith.constant 0 : i32
    return %c0_i32, %c0_i32_0 : i32, i32
  }
  func.func @transform_17(%arg0: i32) -> (i32, i32) {
    %c0_i32 = arith.constant 0 : i32
    %c0_i32_0 = arith.constant 0 : i32
    %c0_i32_1 = arith.constant 0 : i32
    return %c0_i32, %c0_i32_0 : i32, i32
  }
  func.func @transform_18(%arg0: i32) -> (i32, i32) {
    %c0_i32 = arith.constant 0 : i32
    %c0_i32_0 = arith.constant 0 : i32
    %c0_i32_1 = arith.constant 0 : i32
    return %c0_i32, %c0_i32_0 : i32, i32
  }
  func.func @transform_19(%arg0: i32) -> (i32, i32) {
    %c0_i32 = arith.constant 0 : i32
    %c0_i32_0 = arith.constant 0 : i32
    %c0_i32_1 = arith.constant 0 : i32
    return %c0_i32, %c0_i32_0 : i32, i32
  }
  func.func @transform_20(%arg0: i32) -> (i32, i32) {
    %c0_i32 = arith.constant 0 : i32
    %c0_i32_0 = arith.constant 0 : i32
    %c0_i32_1 = arith.constant 0 : i32
    return %c0_i32, %c0_i32_0 : i32, i32
  }
  func.func @transform_21(%arg0: i32) -> (i32, i32) {
    %c0_i32 = arith.constant 0 : i32
    %c0_i32_0 = arith.constant 0 : i32
    return %arg0, %c0_i32 : i32, i32
  }
}

</mosaic_0001>

<bundles_post_ra>
// kernel: tpu_custom_call.1
= control target key start
LH: loop header
LB: loop body
LE: loop exit
PB: predicated region body
PF: predicated region fallthrough
CT: control target
= control target key end

     0   :  { %s3138_s0 = inlined_call_operand.vmem [shape: bf16[128,16], index: 0, kind: input, shape index: {}]   ;;  %s3139_s1 = inlined_call_operand.vmem [shape: bf16[16,8], index: 1, kind: input, shape index: {}]   ;;  %s3140_s2 = inlined_call_operand.vmem [shape: f32[1,8], index: 2, kind: input, shape index: {}]   ;;  %s3141_s3 = inlined_call_operand.vmem [shape: bf16[8,8], index: 3, kind: input, shape index: {}]   ;;  %s3142_s4 = inlined_call_operand.vmem [shape: f32[1,8], index: 4, kind: input, shape index: {}]   ;;  %s3143_s5 = inlined_call_operand.vmem [shape: bf16[16,8], index: 5, kind: input, shape index: {}]   ;;  %s3144_s6 = inlined_call_operand.vmem [shape: f32[1,8], index: 6, kind: input, shape index: {}]   ;;  %s3145_s7 = inlined_call_operand.vmem [shape: bf16[8,8], index: 7, kind: input, shape index: {}]   ;;  %s3146_s8 = inlined_call_operand.vmem [shape: f32[1,8], index: 8, kind: input, shape index: {}]   ;;  %s3147_s9 = inlined_call_operand.vmem [shape: bf16[8,8], index: 9, kind: input, shape index: {}]   ;;  %s3148_s10 = inlined_call_operand.vmem [shape: f32[1,8], index: 10, kind: input, shape index: {}]   ;;  %s3149_s11 = inlined_call_operand.vmem [shape: bf16[8,8], index: 11, kind: input, shape index: {}]   ;;  %s3150_s12 = inlined_call_operand.vmem [shape: f32[1,8], index: 12, kind: input, shape index: {}]   ;;  %s3151_s13 = inlined_call_operand.vmem [shape: bf16[8,8], index: 13, kind: input, shape index: {}]   ;;  %s3152_s14 = inlined_call_operand.vmem [shape: f32[1,8], index: 14, kind: input, shape index: {}]   ;;  %s3153_s15 = inlined_call_operand.vmem [shape: bf16[8,8], index: 15, kind: input, shape index: {}]   ;;  %s3154_s16 = inlined_call_operand.vmem [shape: f32[1,8], index: 16, kind: input, shape index: {}]   ;;  %s3155_s17 = inlined_call_operand.vmem [shape: bf16[8,8], index: 17, kind: input, shape index: {}]   ;;  %s3156_s18 = inlined_call_operand.vmem [shape: f32[1,8], index: 18, kind: input, shape index: {}]   ;;  %s3157_s19 = inlined_call_operand.vmem [shape: bf16[8,8], index: 19, kind: input, shape index: {}]   ;;  %s3158_s20 = inlined_call_operand.vmem [shape: f32[1,8], index: 20, kind: input, shape index: {}]   ;;  %s3159_s21 = inlined_call_operand.vmem [shape: bf16[128,8], index: 21, kind: output, shape index: {}]  }
   0x1   :  { %3160 = sst [smem:[#allocation2_spill]] %s3138_s0 }
   0x2   :  { %3161 = sst [smem:[#allocation3_spill]] %s3139_s1 }
   0x3   :  { %3162 = sst [smem:[#allocation4_spill]] %s3140_s2  ;;  %s2870_s2 = smov 0  }
   0x4   :  { %3163 = sst [smem:[#allocation5_spill]] %s3141_s3 }
   0x5   :  { %3164 = sst [smem:[#allocation6_spill]] %s3142_s4 }
   0x6   :  { %3165 = sst [smem:[#allocation7_spill]] %s3143_s5 }
   0x7 LB: > { %s2177_s25 = sadd.s32 4294967295, %s2758_s2   ;;  %p2181_p0 = scmp.ge.s32.totalorder %s2758_s2, 1  ;;  %s2758_s2 = sphi %s2870_s2, %s31_s2  }
   0x8   : > { %p588_p1 = scmp.lt.s32.totalorder %s2758_s2, 3 }
   0xa   : > { %p589_p2 = pnand %p2181_p0, %p588_p1 }
   0xb   : > { %s3166_s3 = sld [smem:[#allocation3_spill]] (!%p589_p2)  ;;  %s2182_s28 = sshll.u32 (!%p589_p2), %s2177_s25, 3  ;;  %vm704_vm0 = vcmask (!%p589_p2), 130048   ;;  %vm943_vm1 = vcmask (!%p589_p2), 1043456   ;;  %vm930_vm2 = vcmask (!%p589_p2), 64512   ;;  %vm2112_vm3 = vcmask (!%p589_p2), 60416  }
   0xc   : > { %592 = sbr.rel (%p589_p2) target bundleno = 2244 (0x8c4), region = 104  ;;  %p649_p3 = scmp.lt.s32.totalorder (!%p589_p2), %s2182_s28, 15 }
   0xd   : > { %s3167_s30 = sld [smem:[#allocation2_spill]] (!%p589_p2)  ;;  %s3168_s1 = sld [smem:[#allocation7_spill]] (!%p589_p2) }
   0xe   : > { %s3169_s26 = sld [smem:[#allocation5_spill]] (!%p589_p2)  ;;  %s3170_s0 = sld [smem:[#allocation4_spill]] (!%p589_p2) }
   0xf   : > { %s3171_s23 = sld [smem:[#allocation6_spill]] (!%p589_p2) }
  0x11   : > { %v2490_v0 = vld [vmem:[%s3166_s3] sm:$0xff] (!%p589_p2)  }
  0x12   : > { %2384 = vmatprep.subr.bf16.mxu1 (!%p589_p2), %v2490_v0 }
  0x13   : > { %2385 = vmatpush3.bf16.msra.mxu1 %v2490_v0  ;;  %s3173_s28 = smov (!%p649_p3, %s2182_s28), 15  ;;  %v2495_v5 = vld [vmem:[%s3168_s1] sm:$0xff]  }
  0x14   : > { %s2183_s29 = sshll.u32 %s3173_s28, 2  ;;  %2374 = vmatprep.subr.bf16.mxu0 %v2495_v5  ;;  %v922_v6 = vld [vmem:[%s3169_s26] sm:$0xf] }
  0x15   : > { %s652_s5 = scalar_lea.vmem %s3167_s30, %s2183_s29  ;;  %2375 = vmatpush3.bf16.msra.mxu0 %v2495_v5  ;;  %v945_v7 = vsel %vm943_vm1, %v922_v6, 0  ;;  %v2196_v8 = vld [vmem:[%s3170_s0] ss:$0 sm:$0xff]  ;;  %s658_s0 = scalar_lea.vmem %s3159_s21, %s2183_s29 }
  0x16   : > { %v2491_v1 = vld [vmem:[%s652_s5] sm:$0xff]   ;;  %v2492_v2 = vld [vmem:[%s652_s5 + $0x8] sm:$0xff]   ;;  %v2493_v3 = vld [vmem:[%s652_s5 + $0x10] sm:$0xff]   ;;  %2474 = vmatprep.subr.msk.bf16.mxu0 %vm943_vm1, %v922_v6 }
  0x17   : > { %2386 = vmatprep.mubr.msk.bf16.mxu1 %vm704_vm0, %v2491_v1  ;;  %2376 = vmatprep.mubr.msk.bf16.mxu0 %vm704_vm0, %v2491_v1  ;;  %v2494_v4 = vld [vmem:[%s652_s5 + $0x18] sm:$0xff]  }
  0x18   : > { %2387 = vmatmul.mubr.msk.bf16.vlgmr.msra.gmra.mrb[0].mxu1 %vm704_vm0, %v2492_v2  ;;  %2377 = vmatmul.mubr.msk.bf16.vlgmr.msra.gmra.mrb[0].mxu0 %vm704_vm0, %v2492_v2 }
  0x19   : > { %2390 = vmatprep.mubr.msk.bf16.mxu1 %vm704_vm0, %v2493_v3  ;;  %2380 = vmatprep.mubr.msk.bf16.mxu0 %vm704_vm0, %v2493_v3 }
  0x1a   : > { %2395 = vmatpush3.bf16.msra.mxu0 %v945_v7 }
  0x20   : > { %2391 = vmatmul.mubr.msk.bf16.gmra.mrb[4].mxu1 %vm704_vm0, %v2494_v4  ;;  %2381 = vmatmul.mubr.msk.bf16.gmra.mrb[4].mxu0 %vm704_vm0, %v2494_v4 }
  0xeb   : > { %v2388_v9 = vpop.f32.mrb[0].mxu1  ;;  %v2904_v5 = vpop.f32.mrb[0].mxu0 }
  0xec   : > { %v840_v10 = vadd.f32 %v2388_v9, %v2196_v8  ;;  %v831_v11 = vpop.f32.mrb[1].mxu1  ;;  %v2906_v6 = vpop.f32.mrb[1].mxu0 }
  0xed   : > { %v832_v12 = vadd.f32 %v2196_v8, %v831_v11  ;;  %v2389_v13 = vpop.f32.mrb[2].mxu1  ;;  %v2908_v7 = vpop.f32.mrb[2].mxu0 }
  0xee   : > { %v2204_v14 = vmul.f32 -1.442695, %v840_v10  ;;  %v843_v15 = vadd.f32 %v2389_v13, %v2196_v8  ;;  %v834_v16 = vpop.f32.mrb[3].mxu1  ;;  %v1080_v13 = vld [vmem:[%s3145_s7] sm:$0xf] }
  0xef   : > { %v2202_v17 = vmul.f32 -1.442695, %v832_v12  ;;  %v835_v18 = vadd.f32 %v2196_v8, %v834_v16  ;;  %2475 = vmatprep.subr.msk.bf16.mxu1 %vm943_vm1, %v1080_v13 }
  0xf0   : > { %2496 = vpow2.f32 %v2204_v14  ;;  %v2205_v19 = vmul.f32 -1.442695, %v843_v15  ;;  %v1101_v14 = vsel %vm943_vm1, %v1080_v13, 0 }
  0xf1   : > { %2498 = vpow2.f32 %v2202_v17  ;;  %v2203_v20 = vmul.f32 -1.442695, %v835_v18  ;;  %2405 = vmatpush3.bf16.msra.mxu1 %v1101_v14 }
  0xf2   : > { %2500 = vpow2.f32 %v2205_v19 }
  0xf3   : > { %2502 = vpow2.f32 %v2203_v20  ;;  %v2392_v21 = vpop.f32.mrb[4].mxu1 }
  0xf4   : > { %v856_v22 = vadd.f32 %v2392_v21, %v2196_v8  ;;  %v847_v23 = vpop.f32.mrb[5].mxu1 }
  0xf5   : > { %v848_v24 = vadd.f32 %v2196_v8, %v847_v23  ;;  %v2393_v25 = vpop.f32.mrb[6].mxu1 }
  0xf6   : > { %v2208_v26 = vmul.f32 -1.442695, %v856_v22  ;;  %v859_v27 = vadd.f32 %v2393_v25, %v2196_v8  ;;  %v850_v28 = vpop.f32.mrb[7].mxu1 }
  0xf7   : > { %v2206_v29 = vmul.f32 -1.442695, %v848_v24  ;;  %v851_v30 = vadd.f32 %v2196_v8, %v850_v28  ;;  %v2910_v8 = vpop.f32.mrb[3].mxu0 }
  0xf8   : > { %2504 = vpow2.f32 %v2208_v26  ;;  %v2209_v31 = vmul.f32 -1.442695, %v859_v27  ;;  %v2912_v9 = vpop.f32.mrb[4].mxu0 }
  0xf9   : > { %2506 = vpow2.f32 %v2206_v29  ;;  %v2207_v32 = vmul.f32 -1.442695, %v851_v30 }
  0xfa   : > { %v2497_v33 = vpop.eup %2496  ;;  %2508 = vpow2.f32 %v2209_v31 }
  0xfb   : > { %v2499_v34 = vpop.eup %2498  ;;  %v888_v35 = vadd.f32 1.0, %v2497_v33  ;;  %2510 = vpow2.f32 %v2207_v32 }
  0xfc   : > { %v2501_v36 = vpop.eup %2500  ;;  %v886_v37 = vadd.f32 1.0, %v2499_v34 }
  0xfd   : > { %v2503_v38 = vpop.eup %2502  ;;  %2512 = vrcp.f32 %v888_v35  ;;  %v889_v39 = vadd.f32 1.0, %v2501_v36 }
  0xfe   : > { %2514 = vrcp.f32 %v886_v37  ;;  %v887_v40 = vadd.f32 1.0, %v2503_v38 }
  0xff   : > { %2516 = vrcp.f32 %v889_v39 }
 0x100   : > { %2518 = vrcp.f32 %v887_v40 }
 0x102   : > { %v2505_v41 = vpop.eup %2504 }
 0x103   : > { %v2507_v42 = vpop.eup %2506  ;;  %v892_v43 = vadd.f32 1.0, %v2505_v41 }
 0x104   : > { %v2509_v44 = vpop.eup %2508  ;;  %v890_v45 = vadd.f32 1.0, %v2507_v42 }
 0x105   : > { %v2511_v46 = vpop.eup %2510  ;;  %2520 = vrcp.f32 %v892_v43  ;;  %v893_v47 = vadd.f32 1.0, %v2509_v44 }
 0x106   : > { %2522 = vrcp.f32 %v890_v45  ;;  %v891_v48 = vadd.f32 1.0, %v2511_v46 }
 0x107   : > { %v2513_v49 = vpop.eup %2512  ;;  %2524 = vrcp.f32 %v893_v47 }
 0x108   : > { %v2515_v50 = vpop.eup %2514  ;;  %2526 = vrcp.f32 %v891_v48  ;;  %v912_v53 = vmul.f32 %v2513_v49, %v840_v10  ;;  %v2914_v10 = vpop.f32.mrb[5].mxu0 }
 0x109   : > { %v2517_v51 = vpop.eup %2516  ;;  %v910_v55 = vmul.f32 %v2515_v50, %v832_v12  ;;  %v2916_v11 = vpop.f32.mrb[6].mxu0 }
 0x10a   : > { %v2519_v52 = vpop.eup %2518  ;;  %v913_v54 = vmul.f32 %v2517_v51, %v843_v15  ;;  %v2918_v12 = vpop.f32.mrb[7].mxu0  ;;  %v2210_v15 = vld [vmem:[%s3171_s23] ss:$0 sm:$0xff] }
 0x10b   : > { %v911_v56 = vmul.f32 %v2519_v52, %v835_v18 }
 0x10c   : > { %v919_v57 = vpack.c.bf16 %v913_v54, %v912_v53  ;;  %v2186_v54 = vld [vmem:[%s3144_s6] ss:$0 sm:$0xff] }
 0x10d   : > { %v918_v58 = vpack.c.bf16 %v911_v56, %v910_v55 }
 0x10f   : > { %v2521_v59 = vpop.eup %2520  ;;  %2396 = vmatprep.mubr.msk.bf16.mxu0 %vm930_vm2, %v918_v58 }
 0x110   : > { %v2523_v60 = vpop.eup %2522  ;;  %2397 = vmatmul.mubr.msk.bf16.vlgmr.msra.gmra.mrb[8].mxu0 %vm930_vm2, %v919_v57  ;;  %v916_v63 = vmul.f32 %v2521_v59, %v856_v22  ;;  %v760_v59 = vadd.f32 %v2904_v5, %v2186_v54 }
 0x111   : > { %v2525_v61 = vpop.eup %2524  ;;  %v914_v1 = vmul.f32 %v2523_v60, %v848_v24 }
 0x112   : > { %v2527_v62 = vpop.eup %2526  ;;  %v917_v0 = vmul.f32 %v2525_v61, %v859_v27 }
 0x113   : > { %v915_v2 = vmul.f32 %v2527_v62, %v851_v30  ;;  %v752_v62 = vadd.f32 %v2186_v54, %v2906_v6 }
 0x114   : > { %v921_v3 = vpack.c.bf16 %v917_v0, %v916_v63 }
 0x115   : > { %v920_v4 = vpack.c.bf16 %v915_v2, %v914_v1  ;;  %v763_v1 = vadd.f32 %v2908_v7, %v2186_v54 }
 0x117   : > { %2400 = vmatprep.mubr.msk.bf16.mxu0 %vm930_vm2, %v920_v4  ;;  %v755_v4 = vadd.f32 %v2186_v54, %v2910_v8  ;;  %v768_v8 = vadd.f32 %v2186_v54, %v2914_v10 }
 0x118   : > { %2401 = vmatmul.mubr.msk.bf16.gmra.mrb[12].mxu0 %vm930_vm2, %v921_v3 }
 0x1e3   : > { %v2398_v16 = vpop.f32.mrb[8].mxu0 }
 0x1e4   : > { %v990_v17 = vadd.f32 %v2398_v16, %v2210_v15  ;;  %v981_v18 = vpop.f32.mrb[9].mxu0 }
 0x1e5   : > { %v982_v19 = vadd.f32 %v2210_v15, %v981_v18  ;;  %v2399_v20 = vpop.f32.mrb[10].mxu0  ;;  %v776_v18 = vadd.f32 %v2912_v9, %v2186_v54  ;;  %v771_v9 = vadd.f32 %v2186_v54, %v2918_v12  ;;  %v1228_v12 = vld [vmem:[%s3147_s9] sm:$0xf] }
 0x1e6   : > { %v2217_v21 = vmul.f32 -1.442695, %v990_v17  ;;  %v993_v22 = vadd.f32 %v2399_v20, %v2210_v15  ;;  %v984_v23 = vpop.f32.mrb[11].mxu0  ;;  %2476 = vmatprep.subr.msk.bf16.mxu0 %vm943_vm1, %v1228_v12 }
 0x1e7   : > { %v2215_v24 = vmul.f32 -1.442695, %v982_v19  ;;  %v985_v25 = vadd.f32 %v2210_v15, %v984_v23  ;;  %v779_v23 = vadd.f32 %v2916_v11, %v2186_v54 }
 0x1e8   : > { %2528 = vpow2.f32 %v2217_v21  ;;  %v2218_v26 = vmul.f32 -1.442695, %v993_v22 }
 0x1e9   : > { %2530 = vpow2.f32 %v2215_v24  ;;  %v2216_v27 = vmul.f32 -1.442695, %v985_v25 }
 0x1ea   : > { %2532 = vpow2.f32 %v2218_v26 }
 0x1eb   : > { %2534 = vpow2.f32 %v2216_v27  ;;  %v2402_v28 = vpop.f32.mrb[12].mxu0 }
 0x1ec   : > { %v1006_v29 = vadd.f32 %v2402_v28, %v2210_v15  ;;  %v997_v30 = vpop.f32.mrb[13].mxu0 }
 0x1ed   : > { %v998_v31 = vadd.f32 %v2210_v15, %v997_v30  ;;  %v2403_v32 = vpop.f32.mrb[14].mxu0  ;;  %v1249_v30 = vsel %vm943_vm1, %v1228_v12, 0 }
 0x1ee   : > { %v2221_v33 = vmul.f32 -1.442695, %v1006_v29  ;;  %v2928_v34 = vadd.f32 %v2403_v32, %v2210_v15  ;;  %v1000_v35 = vpop.f32.mrb[15].mxu0  ;;  %2415 = vmatpush3.bf16.msra.mxu0 %v1249_v30 }
 0x1ef   : > { %v2219_v36 = vmul.f32 -1.442695, %v998_v31  ;;  %v2930_v37 = vadd.f32 %v2210_v15, %v1000_v35 }
 0x1f0   : > { %2536 = vpow2.f32 %v2221_v33  ;;  %v2222_v38 = vmul.f32 -1.442695, %v2928_v34 }
 0x1f1   : > { %2538 = vpow2.f32 %v2219_v36  ;;  %v2220_v39 = vmul.f32 -1.442695, %v2930_v37 }
 0x1f2   : > { %v2529_v40 = vpop.eup %2528  ;;  %2540 = vpow2.f32 %v2222_v38 }
 0x1f3   : > { %v2531_v41 = vpop.eup %2530  ;;  %v1038_v42 = vadd.f32 1.0, %v2529_v40  ;;  %2542 = vpow2.f32 %v2220_v39 }
 0x1f4   : > { %v2533_v43 = vpop.eup %2532  ;;  %v1036_v44 = vadd.f32 1.0, %v2531_v41 }
 0x1f5   : > { %v2535_v45 = vpop.eup %2534  ;;  %2544 = vrcp.f32 %v1038_v42  ;;  %v1039_v46 = vadd.f32 1.0, %v2533_v43 }
 0x1f6   : > { %2546 = vrcp.f32 %v1036_v44  ;;  %v1037_v47 = vadd.f32 1.0, %v2535_v45 }
 0x1f7   : > { %2548 = vrcp.f32 %v1039_v46 }
 0x1f8   : > { %2550 = vrcp.f32 %v1037_v47 }
 0x1fa   : > { %v2537_v48 = vpop.eup %2536 }
 0x1fb   : > { %v2539_v49 = vpop.eup %2538  ;;  %v1042_v50 = vadd.f32 1.0, %v2537_v48 }
 0x1fc   : > { %v2541_v51 = vpop.eup %2540  ;;  %v1040_v52 = vadd.f32 1.0, %v2539_v49 }
 0x1fd   : > { %v2543_v53 = vpop.eup %2542  ;;  %2552 = vrcp.f32 %v1042_v50  ;;  %v1043_v55 = vadd.f32 1.0, %v2541_v51 }
 0x1fe   : > { %2554 = vrcp.f32 %v1040_v52  ;;  %v1041_v56 = vadd.f32 1.0, %v2543_v53 }
 0x1ff   : > { %v2545_v57 = vpop.eup %2544  ;;  %2556 = vrcp.f32 %v1043_v55 }
 0x200   : > { %v2547_v58 = vpop.eup %2546  ;;  %v1062_v60 = vmul.f32 %v2545_v57, %v990_v17  ;;  %2558 = vrcp.f32 %v1041_v56 }
 0x201   : > { %v2549_v61 = vpop.eup %2548  ;;  %v1060_v63 = vmul.f32 %v2547_v58, %v982_v19 }
 0x202   : > { %v2551_v0 = vpop.eup %2550  ;;  %v2940_v2 = vadd.f32 %v1062_v60, %v760_v59  ;;  %v1063_v3 = vmul.f32 %v2549_v61, %v993_v22 }
 0x203   : > { %v2943_v13 = vadd.f32 %v1060_v63, %v752_v62  ;;  %v1061_v14 = vmul.f32 %v2551_v0, %v985_v25 }
 0x204   : > { %v2945_v15 = vadd.f32 %v1063_v3, %v763_v1 }
 0x205   : > { %v2947_v5 = vadd.f32 %v1061_v14, %v755_v4 }
 0x206   : > { %v1077_v7 = vpack.c.bf16 %v2945_v15, %v2940_v2 }
 0x207   : > { %v2553_v16 = vpop.eup %2552  ;;  %v1076_v6 = vpack.c.bf16 %v2947_v5, %v2943_v13 }
 0x208   : > { %v2555_v17 = vpop.eup %2554  ;;  %v1066_v19 = vmul.f32 %v2553_v16, %v1006_v29 }
 0x209   : > { %v2557_v20 = vpop.eup %2556  ;;  %v1064_v21 = vmul.f32 %v2555_v17, %v998_v31  ;;  %2406 = vmatprep.mubr.msk.bf16.mxu1 %vm930_vm2, %v1076_v6  ;;  %v2223_v31 = vld [vmem:[%s3146_s8] ss:$0 sm:$0xff] }
 0x20a   : > { %v2559_v22 = vpop.eup %2558  ;;  %v2957_v24 = vadd.f32 %v1066_v19, %v776_v18  ;;  %v1067_v25 = vmul.f32 %v2557_v20, %v2928_v34  ;;  %2407 = vmatmul.mubr.msk.bf16.vlgmr.msra.gmra.mrb[8].mxu1 %vm930_vm2, %v1077_v7 }
 0x20b   : > { %v2962_v26 = vadd.f32 %v1064_v21, %v768_v8  ;;  %v1065_v27 = vmul.f32 %v2559_v22, %v2930_v37 }
 0x20c   : > { %v2965_v28 = vadd.f32 %v1067_v25, %v779_v23 }
 0x20d   : > { %v2967_v10 = vadd.f32 %v1065_v27, %v771_v9 }
 0x20e   : > { %v1079_v11 = vpack.c.bf16 %v2965_v28, %v2957_v24 }
 0x20f   : > { %v1078_v29 = vpack.c.bf16 %v2967_v10, %v2962_v26 }
 0x211   : > { %2410 = vmatprep.mubr.msk.bf16.mxu1 %vm930_vm2, %v1078_v29 }
 0x212   : > { %2411 = vmatmul.mubr.msk.bf16.gmra.mrb[12].mxu1 %vm930_vm2, %v1079_v11 }
 0x2dd   : > { %v2408_v32 = vpop.f32.mrb[8].mxu1 }
 0x2de   : > { %v1146_v33 = vadd.f32 %v2408_v32, %v2223_v31  ;;  %v1137_v34 = vpop.f32.mrb[9].mxu1 }
 0x2df   : > { %v1138_v35 = vadd.f32 %v2223_v31, %v1137_v34  ;;  %v2409_v36 = vpop.f32.mrb[10].mxu1 }
 0x2e0   : > { %v2230_v37 = vmul.f32 -1.442695, %v1146_v33  ;;  %v1149_v38 = vadd.f32 %v2409_v36, %v2223_v31  ;;  %v1140_v39 = vpop.f32.mrb[11].mxu1 }
 0x2e1   : > { %v2228_v40 = vmul.f32 -1.442695, %v1138_v35  ;;  %v1141_v41 = vadd.f32 %v2223_v31, %v1140_v39 }
 0x2e2   : > { %2560 = vpow2.f32 %v2230_v37  ;;  %v2231_v42 = vmul.f32 -1.442695, %v1149_v38 }
 0x2e3   : > { %2562 = vpow2.f32 %v2228_v40  ;;  %v2229_v43 = vmul.f32 -1.442695, %v1141_v41 }
 0x2e4   : > { %2564 = vpow2.f32 %v2231_v42 }
 0x2e5   : > { %2566 = vpow2.f32 %v2229_v43  ;;  %v2412_v44 = vpop.f32.mrb[12].mxu1 }
 0x2e6   : > { %v1162_v45 = vadd.f32 %v2412_v44, %v2223_v31  ;;  %v1153_v46 = vpop.f32.mrb[13].mxu1 }
 0x2e7   : > { %v1154_v47 = vadd.f32 %v2223_v31, %v1153_v46  ;;  %v2413_v48 = vpop.f32.mrb[14].mxu1 }
 0x2e8   : > { %v2234_v49 = vmul.f32 -1.442695, %v1162_v45  ;;  %v1165_v50 = vadd.f32 %v2413_v48, %v2223_v31  ;;  %v1156_v51 = vpop.f32.mrb[15].mxu1 }
 0x2e9   : > { %v2232_v52 = vmul.f32 -1.442695, %v1154_v47  ;;  %v1157_v53 = vadd.f32 %v2223_v31, %v1156_v51 }
 0x2ea   : > { %2568 = vpow2.f32 %v2234_v49  ;;  %v2235_v54 = vmul.f32 -1.442695, %v1165_v50 }
 0x2eb   : > { %2570 = vpow2.f32 %v2232_v52  ;;  %v2233_v55 = vmul.f32 -1.442695, %v1157_v53 }
 0x2ec   : > { %v2561_v56 = vpop.eup %2560  ;;  %2572 = vpow2.f32 %v2235_v54 }
 0x2ed   : > { %v2563_v57 = vpop.eup %2562  ;;  %v1194_v58 = vadd.f32 1.0, %v2561_v56  ;;  %2574 = vpow2.f32 %v2233_v55 }
 0x2ee   : > { %v2565_v59 = vpop.eup %2564  ;;  %v1192_v60 = vadd.f32 1.0, %v2563_v57 }
 0x2ef   : > { %v2567_v61 = vpop.eup %2566  ;;  %2576 = vrcp.f32 %v1194_v58  ;;  %v1195_v62 = vadd.f32 1.0, %v2565_v59 }
 0x2f0   : > { %2578 = vrcp.f32 %v1192_v60  ;;  %v1193_v63 = vadd.f32 1.0, %v2567_v61 }
 0x2f1   : > { %2580 = vrcp.f32 %v1195_v62 }
 0x2f2   : > { %2582 = vrcp.f32 %v1193_v63 }
 0x2f4   : > { %v2569_v0 = vpop.eup %2568 }
 0x2f5   : > { %v2571_v1 = vpop.eup %2570  ;;  %v1198_v3 = vadd.f32 1.0, %v2569_v0 }
 0x2f6   : > { %v2573_v4 = vpop.eup %2572  ;;  %v1196_v14 = vadd.f32 1.0, %v2571_v1 }
 0x2f7   : > { %v2575_v16 = vpop.eup %2574  ;;  %2584 = vrcp.f32 %v1198_v3  ;;  %v1199_v6 = vadd.f32 1.0, %v2573_v4 }
 0x2f8   : > { %2586 = vrcp.f32 %v1196_v14  ;;  %v1197_v17 = vadd.f32 1.0, %v2575_v16 }
 0x2f9   : > { %v2577_v18 = vpop.eup %2576  ;;  %2588 = vrcp.f32 %v1199_v6 }
 0x2fa   : > { %v2579_v7 = vpop.eup %2578  ;;  %2590 = vrcp.f32 %v1197_v17  ;;  %v1218_v8 = vmul.f32 %v2577_v18, %v1146_v33  ;;  %v1384_v33 = vld [vmem:[%s3149_s11] sm:$0xf] }
 0x2fb   : > { %v2581_v19 = vpop.eup %2580  ;;  %v1216_v22 = vmul.f32 %v2579_v7, %v1138_v35  ;;  %2477 = vmatprep.subr.msk.bf16.mxu1 %vm943_vm1, %v1384_v33  ;;  %v1405_v35 = vsel %vm943_vm1, %v1384_v33, 0 }
 0x2fc   : > { %v2583_v20 = vpop.eup %2582  ;;  %v1219_v21 = vmul.f32 %v2581_v19, %v1149_v38  ;;  %2425 = vmatpush3.bf16.msra.mxu1 %v1405_v35  ;;  %v2236_v38 = vld [vmem:[%s3148_s10] ss:$0 sm:$0xff] }
 0x2fd   : > { %v1217_v23 = vmul.f32 %v2583_v20, %v1141_v41 }
 0x2fe   : > { %v1225_v25 = vpack.c.bf16 %v1219_v21, %v1218_v8 }
 0x2ff   : > { %v1224_v9 = vpack.c.bf16 %v1217_v23, %v1216_v22 }
 0x301   : > { %v2585_v27 = vpop.eup %2584  ;;  %2416 = vmatprep.mubr.msk.bf16.mxu0 %vm930_vm2, %v1224_v9 }
 0x302   : > { %v2587_v29 = vpop.eup %2586  ;;  %2417 = vmatmul.mubr.msk.bf16.vlgmr.msra.gmra.mrb[16].mxu0 %vm930_vm2, %v1225_v25  ;;  %v1222_v30 = vmul.f32 %v2585_v27, %v1162_v45 }
 0x303   : > { %v2589_v11 = vpop.eup %2588  ;;  %v1220_v32 = vmul.f32 %v2587_v29, %v1154_v47 }
 0x304   : > { %v2591_v12 = vpop.eup %2590  ;;  %v1223_v31 = vmul.f32 %v2589_v11, %v1165_v50 }
 0x305   : > { %v1221_v34 = vmul.f32 %v2591_v12, %v1157_v53 }
 0x306   : > { %v1227_v36 = vpack.c.bf16 %v1223_v31, %v1222_v30 }
 0x307   : > { %v1226_v37 = vpack.c.bf16 %v1221_v34, %v1220_v32 }
 0x309   : > { %2420 = vmatprep.mubr.msk.bf16.mxu0 %vm930_vm2, %v1226_v37 }
 0x30a   : > { %2421 = vmatmul.mubr.msk.bf16.gmra.mrb[20].mxu0 %vm930_vm2, %v1227_v36 }
 0x3d5   : > { %v2418_v39 = vpop.f32.mrb[16].mxu0 }
 0x3d6   : > { %v1294_v40 = vadd.f32 %v2418_v39, %v2236_v38  ;;  %v1285_v41 = vpop.f32.mrb[17].mxu0 }
 0x3d7   : > { %v1286_v42 = vadd.f32 %v2236_v38, %v1285_v41  ;;  %v2419_v43 = vpop.f32.mrb[18].mxu0 }
 0x3d8   : > { %v2243_v44 = vmul.f32 -1.442695, %v1294_v40  ;;  %v1297_v45 = vadd.f32 %v2419_v43, %v2236_v38  ;;  %v1288_v46 = vpop.f32.mrb[19].mxu0 }
 0x3d9   : > { %v2241_v47 = vmul.f32 -1.442695, %v1286_v42  ;;  %v1289_v48 = vadd.f32 %v2236_v38, %v1288_v46 }
 0x3da   : > { %2592 = vpow2.f32 %v2243_v44  ;;  %v2244_v49 = vmul.f32 -1.442695, %v1297_v45 }
 0x3db   : > { %2594 = vpow2.f32 %v2241_v47  ;;  %v2242_v50 = vmul.f32 -1.442695, %v1289_v48 }
 0x3dc   : > { %2596 = vpow2.f32 %v2244_v49 }
 0x3dd   : > { %2598 = vpow2.f32 %v2242_v50  ;;  %v2422_v51 = vpop.f32.mrb[20].mxu0 }
 0x3de   : > { %v1310_v52 = vadd.f32 %v2422_v51, %v2236_v38  ;;  %v1301_v53 = vpop.f32.mrb[21].mxu0 }
 0x3df   : > { %v1302_v54 = vadd.f32 %v2236_v38, %v1301_v53  ;;  %v2423_v55 = vpop.f32.mrb[22].mxu0 }
 0x3e0   : > { %v2247_v56 = vmul.f32 -1.442695, %v1310_v52  ;;  %v1313_v57 = vadd.f32 %v2423_v55, %v2236_v38  ;;  %v1304_v58 = vpop.f32.mrb[23].mxu0 }
 0x3e1   : > { %v2245_v59 = vmul.f32 -1.442695, %v1302_v54  ;;  %v1305_v60 = vadd.f32 %v2236_v38, %v1304_v58 }
 0x3e2   : > { %2600 = vpow2.f32 %v2247_v56  ;;  %v2248_v61 = vmul.f32 -1.442695, %v1313_v57 }
 0x3e3   : > { %2602 = vpow2.f32 %v2245_v59  ;;  %v2246_v62 = vmul.f32 -1.442695, %v1305_v60 }
 0x3e4   : > { %v2593_v63 = vpop.eup %2592  ;;  %2604 = vpow2.f32 %v2248_v61 }
 0x3e5   : > { %v2595_v0 = vpop.eup %2594  ;;  %v1342_v1 = vadd.f32 1.0, %v2593_v63  ;;  %2606 = vpow2.f32 %v2246_v62 }
 0x3e6   : > { %v2597_v3 = vpop.eup %2596  ;;  %v1340_v4 = vadd.f32 1.0, %v2595_v0 }
 0x3e7   : > { %v2599_v14 = vpop.eup %2598  ;;  %2608 = vrcp.f32 %v1342_v1  ;;  %v1343_v16 = vadd.f32 1.0, %v2597_v3 }
 0x3e8   : > { %2610 = vrcp.f32 %v1340_v4  ;;  %v1341_v6 = vadd.f32 1.0, %v2599_v14 }
 0x3e9   : > { %2612 = vrcp.f32 %v1343_v16 }
 0x3ea   : > { %2614 = vrcp.f32 %v1341_v6 }
 0x3ec   : > { %v2601_v17 = vpop.eup %2600 }
 0x3ed   : > { %v2603_v18 = vpop.eup %2602  ;;  %v1346_v7 = vadd.f32 1.0, %v2601_v17 }
 0x3ee   : > { %v2605_v19 = vpop.eup %2604  ;;  %v1344_v20 = vadd.f32 1.0, %v2603_v18 }
 0x3ef   : > { %v2607_v8 = vpop.eup %2606  ;;  %2616 = vrcp.f32 %v1346_v7  ;;  %v1347_v21 = vadd.f32 1.0, %v2605_v19 }
 0x3f0   : > { %2618 = vrcp.f32 %v1344_v20  ;;  %v1345_v22 = vadd.f32 1.0, %v2607_v8 }
 0x3f1   : > { %v2609_v23 = vpop.eup %2608  ;;  %2620 = vrcp.f32 %v1347_v21 }
 0x3f2   : > { %v2611_v25 = vpop.eup %2610  ;;  %2622 = vrcp.f32 %v1345_v22  ;;  %v1366_v11 = vmul.f32 %v2609_v23, %v1294_v40 }
 0x3f3   : > { %v2613_v9 = vpop.eup %2612  ;;  %v1364_v27 = vmul.f32 %v2611_v25, %v1286_v42 }
 0x3f4   : > { %v2615_v29 = vpop.eup %2614  ;;  %v1367_v12 = vmul.f32 %v2613_v9, %v1297_v45  ;;  %v3005_v36 = vadd.f32 %v1366_v11, %v2940_v2 }
 0x3f5   : > { %v1365_v30 = vmul.f32 %v2615_v29, %v1289_v48  ;;  %v2999_v32 = vadd.f32 %v1364_v27, %v2943_v13 }
 0x3f6   : > { %v2996_v31 = vadd.f32 %v1367_v12, %v2945_v15 }
 0x3f7   : > { %v3002_v34 = vadd.f32 %v1365_v30, %v2947_v5 }
 0x3f8   : > { %v1381_v38 = vpack.c.bf16 %v2996_v31, %v3005_v36 }
 0x3f9   : > { %v2617_v37 = vpop.eup %2616  ;;  %v1380_v33 = vpack.c.bf16 %v3002_v34, %v2999_v32 }
 0x3fa   : > { %v2619_v35 = vpop.eup %2618  ;;  %v1370_v40 = vmul.f32 %v2617_v37, %v1310_v52 }
 0x3fb   : > { %v2621_v39 = vpop.eup %2620  ;;  %v1368_v15 = vmul.f32 %v2619_v35, %v1302_v54  ;;  %2426 = vmatprep.mubr.msk.bf16.mxu1 %vm930_vm2, %v1380_v33 }
 0x3fc   : > { %v2623_v13 = vpop.eup %2622  ;;  %v1371_v41 = vmul.f32 %v2621_v39, %v1313_v57  ;;  %2427 = vmatmul.mubr.msk.bf16.vlgmr.msra.gmra.mrb[16].mxu1 %vm930_vm2, %v1381_v38  ;;  %v3023_v44 = vadd.f32 %v1370_v40, %v2957_v24  ;;  %v2249_v24 = vld [vmem:[%s3150_s12] ss:$0 sm:$0xff] }
 0x3fd   : > { %v1369_v5 = vmul.f32 %v2623_v13, %v1305_v60  ;;  %v3017_v42 = vadd.f32 %v1368_v15, %v2962_v26  ;;  %v1532_v26 = vld [vmem:[%s3151_s13] sm:$0xf] }
 0x3fe   : > { %v3014_v2 = vadd.f32 %v1371_v41, %v2965_v28  ;;  %2478 = vmatprep.subr.msk.bf16.mxu0 %vm943_vm1, %v1532_v26  ;;  %v1553_v28 = vsel %vm943_vm1, %v1532_v26, 0 }
 0x3ff   : > { %v3020_v43 = vadd.f32 %v1369_v5, %v2967_v10  ;;  %2435 = vmatpush3.bf16.msra.mxu0 %v1553_v28 }
 0x400   : > { %v1383_v46 = vpack.c.bf16 %v3014_v2, %v3023_v44 }
 0x401   : > { %v1382_v45 = vpack.c.bf16 %v3020_v43, %v3017_v42 }
 0x403   : > { %2430 = vmatprep.mubr.msk.bf16.mxu1 %vm930_vm2, %v1382_v45 }
 0x404   : > { %2431 = vmatmul.mubr.msk.bf16.gmra.mrb[20].mxu1 %vm930_vm2, %v1383_v46 }
 0x4cf   : > { %v2428_v10 = vpop.f32.mrb[16].mxu1 }
 0x4d0   : > { %v1450_v47 = vadd.f32 %v2428_v10, %v2249_v24  ;;  %v1441_v48 = vpop.f32.mrb[17].mxu1 }
 0x4d1   : > { %v1442_v49 = vadd.f32 %v2249_v24, %v1441_v48  ;;  %v2429_v50 = vpop.f32.mrb[18].mxu1 }
 0x4d2   : > { %v2256_v51 = vmul.f32 -1.442695, %v1450_v47  ;;  %v1453_v52 = vadd.f32 %v2429_v50, %v2249_v24  ;;  %v1444_v53 = vpop.f32.mrb[19].mxu1 }
 0x4d3   : > { %v2254_v54 = vmul.f32 -1.442695, %v1442_v49  ;;  %v1445_v55 = vadd.f32 %v2249_v24, %v1444_v53 }
 0x4d4   : > { %2624 = vpow2.f32 %v2256_v51  ;;  %v2257_v56 = vmul.f32 -1.442695, %v1453_v52 }
 0x4d5   : > { %2626 = vpow2.f32 %v2254_v54  ;;  %v2255_v57 = vmul.f32 -1.442695, %v1445_v55 }
 0x4d6   : > { %2628 = vpow2.f32 %v2257_v56 }
 0x4d7   : > { %2630 = vpow2.f32 %v2255_v57  ;;  %v2432_v58 = vpop.f32.mrb[20].mxu1 }
 0x4d8   : > { %v1466_v59 = vadd.f32 %v2432_v58, %v2249_v24  ;;  %v1457_v60 = vpop.f32.mrb[21].mxu1 }
 0x4d9   : > { %v1458_v61 = vadd.f32 %v2249_v24, %v1457_v60  ;;  %v2433_v62 = vpop.f32.mrb[22].mxu1 }
 0x4da   : > { %v2260_v63 = vmul.f32 -1.442695, %v1466_v59  ;;  %v1469_v0 = vadd.f32 %v2433_v62, %v2249_v24  ;;  %v1460_v1 = vpop.f32.mrb[23].mxu1 }
 0x4db   : > { %v2258_v3 = vmul.f32 -1.442695, %v1458_v61  ;;  %v1461_v4 = vadd.f32 %v2249_v24, %v1460_v1 }
 0x4dc   : > { %2632 = vpow2.f32 %v2260_v63  ;;  %v2261_v14 = vmul.f32 -1.442695, %v1469_v0 }
 0x4dd   : > { %2634 = vpow2.f32 %v2258_v3  ;;  %v2259_v16 = vmul.f32 -1.442695, %v1461_v4 }
 0x4de   : > { %v2625_v6 = vpop.eup %2624  ;;  %2636 = vpow2.f32 %v2261_v14 }
 0x4df   : > { %v2627_v17 = vpop.eup %2626  ;;  %v1498_v18 = vadd.f32 1.0, %v2625_v6  ;;  %2638 = vpow2.f32 %v2259_v16 }
 0x4e0   : > { %v2629_v7 = vpop.eup %2628  ;;  %v1496_v19 = vadd.f32 1.0, %v2627_v17 }
 0x4e1   : > { %v2631_v20 = vpop.eup %2630  ;;  %2640 = vrcp.f32 %v1498_v18  ;;  %v1499_v8 = vadd.f32 1.0, %v2629_v7 }
 0x4e2   : > { %2642 = vrcp.f32 %v1496_v19  ;;  %v1497_v21 = vadd.f32 1.0, %v2631_v20 }
 0x4e3   : > { %2644 = vrcp.f32 %v1499_v8 }
 0x4e4   : > { %2646 = vrcp.f32 %v1497_v21 }
 0x4e6   : > { %v2633_v22 = vpop.eup %2632 }
 0x4e7   : > { %v2635_v23 = vpop.eup %2634  ;;  %v1502_v25 = vadd.f32 1.0, %v2633_v22 }
 0x4e8   : > { %v2637_v9 = vpop.eup %2636  ;;  %v1500_v27 = vadd.f32 1.0, %v2635_v23 }
 0x4e9   : > { %v2639_v29 = vpop.eup %2638  ;;  %2648 = vrcp.f32 %v1502_v25  ;;  %v1503_v11 = vadd.f32 1.0, %v2637_v9 }
 0x4ea   : > { %2650 = vrcp.f32 %v1500_v27  ;;  %v1501_v12 = vadd.f32 1.0, %v2639_v29 }
 0x4eb   : > { %v2641_v30 = vpop.eup %2640  ;;  %2652 = vrcp.f32 %v1503_v11 }
 0x4ec   : > { %v2643_v37 = vpop.eup %2642  ;;  %2654 = vrcp.f32 %v1501_v12  ;;  %v1522_v38 = vmul.f32 %v2641_v30, %v1450_v47  ;;  %v1688_v47 = vld [vmem:[%s3153_s15] sm:$0xf] }
 0x4ed   : > { %v2645_v33 = vpop.eup %2644  ;;  %v1520_v15 = vmul.f32 %v2643_v37, %v1442_v49  ;;  %2479 = vmatprep.subr.msk.bf16.mxu1 %vm943_vm1, %v1688_v47  ;;  %v1709_v49 = vsel %vm943_vm1, %v1688_v47, 0 }
 0x4ee   : > { %v2647_v35 = vpop.eup %2646  ;;  %v1523_v39 = vmul.f32 %v2645_v33, %v1453_v52  ;;  %2445 = vmatpush3.bf16.msra.mxu1 %v1709_v49  ;;  %v2262_v52 = vld [vmem:[%s3152_s14] ss:$0 sm:$0xff] }
 0x4ef   : > { %v1521_v13 = vmul.f32 %v2647_v35, %v1445_v55 }
 0x4f0   : > { %v1529_v40 = vpack.c.bf16 %v1523_v39, %v1522_v38 }
 0x4f1   : > { %v1528_v41 = vpack.c.bf16 %v1521_v13, %v1520_v15 }
 0x4f3   : > { %v2649_v5 = vpop.eup %2648  ;;  %2436 = vmatprep.mubr.msk.bf16.mxu0 %vm930_vm2, %v1528_v41 }
 0x4f4   : > { %v2651_v45 = vpop.eup %2650  ;;  %2437 = vmatmul.mubr.msk.bf16.vlgmr.msra.gmra.mrb[24].mxu0 %vm930_vm2, %v1529_v40  ;;  %v1526_v28 = vmul.f32 %v2649_v5, %v1466_v59 }
 0x4f5   : > { %v2653_v46 = vpop.eup %2652  ;;  %v1524_v10 = vmul.f32 %v2651_v45, %v1458_v61 }
 0x4f6   : > { %v2655_v26 = vpop.eup %2654  ;;  %v1527_v24 = vmul.f32 %v2653_v46, %v1469_v0 }
 0x4f7   : > { %v1525_v48 = vmul.f32 %v2655_v26, %v1461_v4 }
 0x4f8   : > { %v1531_v50 = vpack.c.bf16 %v1527_v24, %v1526_v28 }
 0x4f9   : > { %v1530_v51 = vpack.c.bf16 %v1525_v48, %v1524_v10 }
 0x4fb   : > { %2440 = vmatprep.mubr.msk.bf16.mxu0 %vm930_vm2, %v1530_v51 }
 0x4fc   : > { %2441 = vmatmul.mubr.msk.bf16.gmra.mrb[28].mxu0 %vm930_vm2, %v1531_v50 }
 0x5c7   : > { %v2438_v53 = vpop.f32.mrb[24].mxu0 }
 0x5c8   : > { %v1598_v54 = vadd.f32 %v2438_v53, %v2262_v52  ;;  %v1589_v55 = vpop.f32.mrb[25].mxu0 }
 0x5c9   : > { %v1590_v56 = vadd.f32 %v2262_v52, %v1589_v55  ;;  %v2439_v57 = vpop.f32.mrb[26].mxu0 }
 0x5ca   : > { %v2269_v58 = vmul.f32 -1.442695, %v1598_v54  ;;  %v1601_v59 = vadd.f32 %v2439_v57, %v2262_v52  ;;  %v1592_v60 = vpop.f32.mrb[27].mxu0 }
 0x5cb   : > { %v2267_v61 = vmul.f32 -1.442695, %v1590_v56  ;;  %v1593_v62 = vadd.f32 %v2262_v52, %v1592_v60 }
 0x5cc   : > { %2656 = vpow2.f32 %v2269_v58  ;;  %v2270_v63 = vmul.f32 -1.442695, %v1601_v59 }
 0x5cd   : > { %2658 = vpow2.f32 %v2267_v61  ;;  %v2268_v0 = vmul.f32 -1.442695, %v1593_v62 }
 0x5ce   : > { %2660 = vpow2.f32 %v2270_v63 }
 0x5cf   : > { %2662 = vpow2.f32 %v2268_v0  ;;  %v2442_v1 = vpop.f32.mrb[28].mxu0 }
 0x5d0   : > { %v1614_v3 = vadd.f32 %v2442_v1, %v2262_v52  ;;  %v1605_v4 = vpop.f32.mrb[29].mxu0 }
 0x5d1   : > { %v1606_v14 = vadd.f32 %v2262_v52, %v1605_v4  ;;  %v2443_v16 = vpop.f32.mrb[30].mxu0 }
 0x5d2   : > { %v2273_v6 = vmul.f32 -1.442695, %v1614_v3  ;;  %v1617_v17 = vadd.f32 %v2443_v16, %v2262_v52  ;;  %v1608_v18 = vpop.f32.mrb[31].mxu0 }
 0x5d3   : > { %v2271_v7 = vmul.f32 -1.442695, %v1606_v14  ;;  %v1609_v19 = vadd.f32 %v2262_v52, %v1608_v18 }
 0x5d4   : > { %2664 = vpow2.f32 %v2273_v6  ;;  %v2274_v20 = vmul.f32 -1.442695, %v1617_v17 }
 0x5d5   : > { %2666 = vpow2.f32 %v2271_v7  ;;  %v2272_v8 = vmul.f32 -1.442695, %v1609_v19 }
 0x5d6   : > { %v2657_v21 = vpop.eup %2656  ;;  %2668 = vpow2.f32 %v2274_v20 }
 0x5d7   : > { %v2659_v22 = vpop.eup %2658  ;;  %v1646_v23 = vadd.f32 1.0, %v2657_v21  ;;  %2670 = vpow2.f32 %v2272_v8 }
 0x5d8   : > { %v2661_v25 = vpop.eup %2660  ;;  %v1644_v9 = vadd.f32 1.0, %v2659_v22 }
 0x5d9   : > { %v2663_v27 = vpop.eup %2662  ;;  %2672 = vrcp.f32 %v1646_v23  ;;  %v1647_v29 = vadd.f32 1.0, %v2661_v25 }
 0x5da   : > { %2674 = vrcp.f32 %v1644_v9  ;;  %v1645_v11 = vadd.f32 1.0, %v2663_v27 }
 0x5db   : > { %2676 = vrcp.f32 %v1647_v29 }
 0x5dc   : > { %2678 = vrcp.f32 %v1645_v11 }
 0x5de   : > { %v2665_v12 = vpop.eup %2664 }
 0x5df   : > { %v2667_v30 = vpop.eup %2666  ;;  %v1650_v37 = vadd.f32 1.0, %v2665_v12 }
 0x5e0   : > { %v2669_v33 = vpop.eup %2668  ;;  %v1648_v35 = vadd.f32 1.0, %v2667_v30 }
 0x5e1   : > { %v2671_v38 = vpop.eup %2670  ;;  %2680 = vrcp.f32 %v1650_v37  ;;  %v1651_v39 = vadd.f32 1.0, %v2669_v33 }
 0x5e2   : > { %2682 = vrcp.f32 %v1648_v35  ;;  %v1649_v15 = vadd.f32 1.0, %v2671_v38 }
 0x5e3   : > { %v2673_v13 = vpop.eup %2672  ;;  %2684 = vrcp.f32 %v1651_v39 }
 0x5e4   : > { %v2675_v40 = vpop.eup %2674  ;;  %2686 = vrcp.f32 %v1649_v15  ;;  %v1670_v46 = vmul.f32 %v2673_v13, %v1598_v54 }
 0x5e5   : > { %v2677_v41 = vpop.eup %2676  ;;  %v1668_v5 = vmul.f32 %v2675_v40, %v1590_v56 }
 0x5e6   : > { %v2679_v45 = vpop.eup %2678  ;;  %v1671_v26 = vmul.f32 %v2677_v41, %v1601_v59  ;;  %v3061_v50 = vadd.f32 %v1670_v46, %v3005_v36 }
 0x5e7   : > { %v1669_v28 = vmul.f32 %v2679_v45, %v1593_v62  ;;  %v3055_v10 = vadd.f32 %v1668_v5, %v2999_v32 }
 0x5e8   : > { %v3052_v24 = vadd.f32 %v1671_v26, %v2996_v31 }
 0x5e9   : > { %v3058_v48 = vadd.f32 %v1669_v28, %v3002_v34 }
 0x5ea   : > { %v1685_v52 = vpack.c.bf16 %v3052_v24, %v3061_v50 }
 0x5eb   : > { %v2681_v51 = vpop.eup %2680  ;;  %v1684_v47 = vpack.c.bf16 %v3058_v48, %v3055_v10 }
 0x5ec   : > { %v2683_v49 = vpop.eup %2682  ;;  %v1674_v54 = vmul.f32 %v2681_v51, %v1614_v3 }
 0x5ed   : > { %v2685_v53 = vpop.eup %2684  ;;  %v1672_v31 = vmul.f32 %v2683_v49, %v1606_v14  ;;  %2446 = vmatprep.mubr.msk.bf16.mxu1 %vm930_vm2, %v1684_v47 }
 0x5ee   : > { %v2687_v32 = vpop.eup %2686  ;;  %v1675_v55 = vmul.f32 %v2685_v53, %v1617_v17  ;;  %2447 = vmatmul.mubr.msk.bf16.vlgmr.msra.gmra.mrb[24].mxu1 %vm930_vm2, %v1685_v52  ;;  %v3079_v58 = vadd.f32 %v1674_v54, %v3023_v44 }
 0x5ef   : > { %v1673_v34 = vmul.f32 %v2687_v32, %v1609_v19  ;;  %v3073_v56 = vadd.f32 %v1672_v31, %v3017_v42 }
 0x5f0   : > { %v3070_v36 = vadd.f32 %v1675_v55, %v3014_v2  ;;  %v1836_v2 = vld [vmem:[%s3155_s17] sm:$0xf] }
 0x5f1   : > { %v3076_v57 = vadd.f32 %v1673_v34, %v3020_v43  ;;  %2480 = vmatprep.subr.msk.bf16.mxu0 %vm943_vm1, %v1836_v2  ;;  %v1857_v42 = vsel %vm943_vm1, %v1836_v2, 0  ;;  %v2275_v43 = vld [vmem:[%s3154_s16] ss:$0 sm:$0xff] }
 0x5f2   : > { %v1687_v60 = vpack.c.bf16 %v3070_v36, %v3079_v58  ;;  %2455 = vmatpush3.bf16.msra.mxu0 %v1857_v42 }
 0x5f3   : > { %v1686_v59 = vpack.c.bf16 %v3076_v57, %v3073_v56 }
 0x5f5   : > { %2450 = vmatprep.mubr.msk.bf16.mxu1 %vm930_vm2, %v1686_v59 }
 0x5f6   : > { %2451 = vmatmul.mubr.msk.bf16.gmra.mrb[28].mxu1 %vm930_vm2, %v1687_v60 }
 0x6c1   : > { %v2448_v44 = vpop.f32.mrb[24].mxu1 }
 0x6c2   : > { %v1754_v61 = vadd.f32 %v2448_v44, %v2275_v43  ;;  %v1745_v62 = vpop.f32.mrb[25].mxu1 }
 0x6c3   : > { %v1746_v63 = vadd.f32 %v2275_v43, %v1745_v62  ;;  %v2449_v0 = vpop.f32.mrb[26].mxu1 }
 0x6c4   : > { %v2282_v1 = vmul.f32 -1.442695, %v1754_v61  ;;  %v1757_v3 = vadd.f32 %v2449_v0, %v2275_v43  ;;  %v1748_v4 = vpop.f32.mrb[27].mxu1 }
 0x6c5   : > { %v2280_v14 = vmul.f32 -1.442695, %v1746_v63  ;;  %v1749_v16 = vadd.f32 %v2275_v43, %v1748_v4 }
 0x6c6   : > { %2688 = vpow2.f32 %v2282_v1  ;;  %v2283_v6 = vmul.f32 -1.442695, %v1757_v3 }
 0x6c7   : > { %2690 = vpow2.f32 %v2280_v14  ;;  %v2281_v17 = vmul.f32 -1.442695, %v1749_v16 }
 0x6c8   : > { %2692 = vpow2.f32 %v2283_v6 }
 0x6c9   : > { %2694 = vpow2.f32 %v2281_v17  ;;  %v2452_v18 = vpop.f32.mrb[28].mxu1 }
 0x6ca   : > { %v1770_v7 = vadd.f32 %v2452_v18, %v2275_v43  ;;  %v1761_v19 = vpop.f32.mrb[29].mxu1 }
 0x6cb   : > { %v1762_v20 = vadd.f32 %v2275_v43, %v1761_v19  ;;  %v2453_v8 = vpop.f32.mrb[30].mxu1 }
 0x6cc   : > { %v2286_v21 = vmul.f32 -1.442695, %v1770_v7  ;;  %v1773_v22 = vadd.f32 %v2453_v8, %v2275_v43  ;;  %v1764_v23 = vpop.f32.mrb[31].mxu1 }
 0x6cd   : > { %v2284_v25 = vmul.f32 -1.442695, %v1762_v20  ;;  %v1765_v9 = vadd.f32 %v2275_v43, %v1764_v23 }
 0x6ce   : > { %2696 = vpow2.f32 %v2286_v21  ;;  %v2287_v27 = vmul.f32 -1.442695, %v1773_v22 }
 0x6cf   : > { %2698 = vpow2.f32 %v2284_v25  ;;  %v2285_v29 = vmul.f32 -1.442695, %v1765_v9 }
 0x6d0   : > { %v2689_v11 = vpop.eup %2688  ;;  %2700 = vpow2.f32 %v2287_v27 }
 0x6d1   : > { %v2691_v12 = vpop.eup %2690  ;;  %v1802_v30 = vadd.f32 1.0, %v2689_v11  ;;  %2702 = vpow2.f32 %v2285_v29 }
 0x6d2   : > { %v2693_v37 = vpop.eup %2692  ;;  %v1800_v33 = vadd.f32 1.0, %v2691_v12 }
 0x6d3   : > { %v2695_v35 = vpop.eup %2694  ;;  %2704 = vrcp.f32 %v1802_v30  ;;  %v1803_v38 = vadd.f32 1.0, %v2693_v37 }
 0x6d4   : > { %2706 = vrcp.f32 %v1800_v33  ;;  %v1801_v39 = vadd.f32 1.0, %v2695_v35 }
 0x6d5   : > { %2708 = vrcp.f32 %v1803_v38 }
 0x6d6   : > { %2710 = vrcp.f32 %v1801_v39 }
 0x6d8   : > { %v2697_v15 = vpop.eup %2696 }
 0x6d9   : > { %v2699_v13 = vpop.eup %2698  ;;  %v1806_v40 = vadd.f32 1.0, %v2697_v15 }
 0x6da   : > { %v2701_v41 = vpop.eup %2700  ;;  %v1804_v5 = vadd.f32 1.0, %v2699_v13 }
 0x6db   : > { %v2703_v45 = vpop.eup %2702  ;;  %2712 = vrcp.f32 %v1806_v40  ;;  %v1807_v46 = vadd.f32 1.0, %v2701_v41 }
 0x6dc   : > { %2714 = vrcp.f32 %v1804_v5  ;;  %v1805_v26 = vadd.f32 1.0, %v2703_v45 }
 0x6dd   : > { %v2705_v28 = vpop.eup %2704  ;;  %2716 = vrcp.f32 %v1807_v46 }
 0x6de   : > { %v2707_v51 = vpop.eup %2706  ;;  %2718 = vrcp.f32 %v1805_v26  ;;  %v1826_v52 = vmul.f32 %v2705_v28, %v1754_v61  ;;  %v1992_v61 = vld [vmem:[%s3157_s19] sm:$0xf] }
 0x6df   : > { %v2709_v47 = vpop.eup %2708  ;;  %v1824_v31 = vmul.f32 %v2707_v51, %v1746_v63  ;;  %2481 = vmatprep.subr.msk.bf16.mxu1 %vm943_vm1, %v1992_v61  ;;  %v2013_v63 = vsel %vm943_vm1, %v1992_v61, 0 }
 0x6e0   : > { %v2711_v49 = vpop.eup %2710  ;;  %v1827_v53 = vmul.f32 %v2709_v47, %v1757_v3  ;;  %2465 = vmatpush3.bf16.msra.mxu1 %v2013_v63  ;;  %v2288_v3 = vld [vmem:[%s3156_s18] ss:$0 sm:$0xff] }
 0x6e1   : > { %v1825_v32 = vmul.f32 %v2711_v49, %v1749_v16 }
 0x6e2   : > { %v1833_v54 = vpack.c.bf16 %v1827_v53, %v1826_v52 }
 0x6e3   : > { %v1832_v55 = vpack.c.bf16 %v1825_v32, %v1824_v31 }
 0x6e5   : > { %v2713_v34 = vpop.eup %2712  ;;  %2456 = vmatprep.mubr.msk.bf16.mxu0 %vm930_vm2, %v1832_v55 }
 0x6e6   : > { %v2715_v59 = vpop.eup %2714  ;;  %2457 = vmatmul.mubr.msk.bf16.vlgmr.msra.gmra.mrb[32].mxu0 %vm930_vm2, %v1833_v54  ;;  %v1830_v42 = vmul.f32 %v2713_v34, %v1770_v7 }
 0x6e7   : > { %v2717_v60 = vpop.eup %2716  ;;  %v1828_v44 = vmul.f32 %v2715_v59, %v1762_v20 }
 0x6e8   : > { %v2719_v2 = vpop.eup %2718  ;;  %v1831_v43 = vmul.f32 %v2717_v60, %v1773_v22 }
 0x6e9   : > { %v1829_v62 = vmul.f32 %v2719_v2, %v1765_v9 }
 0x6ea   : > { %v1835_v0 = vpack.c.bf16 %v1831_v43, %v1830_v42 }
 0x6eb   : > { %v1834_v1 = vpack.c.bf16 %v1829_v62, %v1828_v44 }
 0x6ed   : > { %2460 = vmatprep.mubr.msk.bf16.mxu0 %vm930_vm2, %v1834_v1 }
 0x6ee   : > { %2461 = vmatmul.mubr.msk.bf16.gmra.mrb[36].mxu0 %vm930_vm2, %v1835_v0 }
 0x7b9   : > { %v2458_v4 = vpop.f32.mrb[32].mxu0 }
 0x7ba   : > { %v1902_v14 = vadd.f32 %v2458_v4, %v2288_v3  ;;  %v1893_v16 = vpop.f32.mrb[33].mxu0 }
 0x7bb   : > { %v1894_v6 = vadd.f32 %v2288_v3, %v1893_v16  ;;  %v2459_v17 = vpop.f32.mrb[34].mxu0 }
 0x7bc   : > { %v2295_v18 = vmul.f32 -1.442695, %v1902_v14  ;;  %v1905_v7 = vadd.f32 %v2459_v17, %v2288_v3  ;;  %v1896_v19 = vpop.f32.mrb[35].mxu0 }
 0x7bd   : > { %v2293_v20 = vmul.f32 -1.442695, %v1894_v6  ;;  %v1897_v8 = vadd.f32 %v2288_v3, %v1896_v19 }
 0x7be   : > { %2720 = vpow2.f32 %v2295_v18  ;;  %v2296_v21 = vmul.f32 -1.442695, %v1905_v7 }
 0x7bf   : > { %2722 = vpow2.f32 %v2293_v20  ;;  %v2294_v22 = vmul.f32 -1.442695, %v1897_v8  ;;  %v2301_v20 = vld [vmem:[%s3158_s20] ss:$0 sm:$0xff] }
 0x7c0   : > { %2724 = vpow2.f32 %v2296_v21 }
 0x7c1   : > { %2726 = vpow2.f32 %v2294_v22  ;;  %v2462_v23 = vpop.f32.mrb[36].mxu0 }
 0x7c2   : > { %v1918_v25 = vadd.f32 %v2462_v23, %v2288_v3  ;;  %v1909_v9 = vpop.f32.mrb[37].mxu0 }
 0x7c3   : > { %v1910_v27 = vadd.f32 %v2288_v3, %v1909_v9  ;;  %v2463_v29 = vpop.f32.mrb[38].mxu0 }
 0x7c4   : > { %v2299_v11 = vmul.f32 -1.442695, %v1918_v25  ;;  %v1921_v12 = vadd.f32 %v2463_v29, %v2288_v3  ;;  %v1912_v30 = vpop.f32.mrb[39].mxu0 }
 0x7c5   : > { %v2297_v37 = vmul.f32 -1.442695, %v1910_v27  ;;  %v1913_v33 = vadd.f32 %v2288_v3, %v1912_v30 }
 0x7c6   : > { %2728 = vpow2.f32 %v2299_v11  ;;  %v2300_v35 = vmul.f32 -1.442695, %v1921_v12 }
 0x7c7   : > { %2730 = vpow2.f32 %v2297_v37  ;;  %v2298_v38 = vmul.f32 -1.442695, %v1913_v33 }
 0x7c8   : > { %v2721_v39 = vpop.eup %2720  ;;  %2732 = vpow2.f32 %v2300_v35 }
 0x7c9   : > { %v2723_v15 = vpop.eup %2722  ;;  %v1950_v13 = vadd.f32 1.0, %v2721_v39  ;;  %2734 = vpow2.f32 %v2298_v38 }
 0x7ca   : > { %v2725_v40 = vpop.eup %2724  ;;  %v1948_v41 = vadd.f32 1.0, %v2723_v15 }
 0x7cb   : > { %v2727_v5 = vpop.eup %2726  ;;  %2736 = vrcp.f32 %v1950_v13  ;;  %v1951_v45 = vadd.f32 1.0, %v2725_v40 }
 0x7cc   : > { %2738 = vrcp.f32 %v1948_v41  ;;  %v1949_v46 = vadd.f32 1.0, %v2727_v5 }
 0x7cd   : > { %2740 = vrcp.f32 %v1951_v45 }
 0x7ce   : > { %2742 = vrcp.f32 %v1949_v46 }
 0x7d0   : > { %v2729_v26 = vpop.eup %2728 }
 0x7d1   : > { %v2731_v28 = vpop.eup %2730  ;;  %v1954_v51 = vadd.f32 1.0, %v2729_v26 }
 0x7d2   : > { %v2733_v47 = vpop.eup %2732  ;;  %v1952_v49 = vadd.f32 1.0, %v2731_v28 }
 0x7d3   : > { %v2735_v52 = vpop.eup %2734  ;;  %2744 = vrcp.f32 %v1954_v51  ;;  %v1955_v53 = vadd.f32 1.0, %v2733_v47 }
 0x7d4   : > { %2746 = vrcp.f32 %v1952_v49  ;;  %v1953_v31 = vadd.f32 1.0, %v2735_v52 }
 0x7d5   : > { %v2737_v32 = vpop.eup %2736  ;;  %2748 = vrcp.f32 %v1955_v53 }
 0x7d6   : > { %v2739_v54 = vpop.eup %2738  ;;  %v1974_v55 = vmul.f32 %v2737_v32, %v1902_v14  ;;  %2750 = vrcp.f32 %v1953_v31 }
 0x7d7   : > { %v2741_v34 = vpop.eup %2740  ;;  %v1972_v59 = vmul.f32 %v2739_v54, %v1894_v6 }
 0x7d8   : > { %v2743_v60 = vpop.eup %2742  ;;  %v1975_v2 = vmul.f32 %v2741_v34, %v1905_v7  ;;  %v1982_v43 = vadd.f32 %v1974_v55, %v3061_v50 }
 0x7d9   : > { %v1973_v42 = vmul.f32 %v2743_v60, %v1897_v8  ;;  %v1980_v62 = vadd.f32 %v1972_v59, %v3055_v10 }
 0x7da   : > { %v1983_v44 = vadd.f32 %v1975_v2, %v3052_v24 }
 0x7db   : > { %v1981_v0 = vadd.f32 %v1973_v42, %v3058_v48 }
 0x7dc   : > { %v1989_v1 = vpack.c.bf16 %v1983_v44, %v1982_v43 }
 0x7dd   : > { %v2745_v61 = vpop.eup %2744  ;;  %v1988_v63 = vpack.c.bf16 %v1981_v0, %v1980_v62 }
 0x7de   : > { %v2747_v3 = vpop.eup %2746  ;;  %v1978_v4 = vmul.f32 %v2745_v61, %v1918_v25 }
 0x7df   : > { %v2749_v14 = vpop.eup %2748  ;;  %v1976_v16 = vmul.f32 %v2747_v3, %v1910_v27  ;;  %2466 = vmatprep.mubr.msk.bf16.mxu1 %vm930_vm2, %v1988_v63 }
 0x7e0   : > { %v2751_v6 = vpop.eup %2750  ;;  %v1979_v17 = vmul.f32 %v2749_v14, %v1921_v12  ;;  %2467 = vmatmul.mubr.msk.bf16.vlgmr.msra.gmra.mrb[32].mxu1 %vm930_vm2, %v1989_v1  ;;  %v1986_v24 = vadd.f32 %v1978_v4, %v3079_v58 }
 0x7e1   : > { %v1977_v50 = vmul.f32 %v2751_v6, %v1913_v33  ;;  %v1984_v48 = vadd.f32 %v1976_v16, %v3073_v56 }
 0x7e2   : > { %v1987_v10 = vadd.f32 %v1979_v17, %v3070_v36 }
 0x7e3   : > { %v1985_v18 = vadd.f32 %v1977_v50, %v3076_v57 }
 0x7e4   : > { %v1991_v7 = vpack.c.bf16 %v1987_v10, %v1986_v24 }
 0x7e5   : > { %v1990_v19 = vpack.c.bf16 %v1985_v18, %v1984_v48 }
 0x7e7   : > { %2470 = vmatprep.mubr.msk.bf16.mxu1 %vm930_vm2, %v1990_v19 }
 0x7e8   : > { %2471 = vmatmul.mubr.msk.bf16.gmra.mrb[36].mxu1 %vm930_vm2, %v1991_v7 }
 0x8b3   : > { %v2468_v8 = vpop.f32.mrb[32].mxu1 }
 0x8b4   : > { %v2058_v21 = vadd.f32 %v2468_v8, %v2301_v20  ;;  %v2049_v22 = vpop.f32.mrb[33].mxu1 }
 0x8b5   : > { %v2050_v36 = vadd.f32 %v2301_v20, %v2049_v22  ;;  %v2469_v56 = vpop.f32.mrb[34].mxu1 }
 0x8b6   : > { %v2318_v57 = vpack.c.bf16 %v2058_v21, %v2058_v21  ;;  %v2061_v58 = vadd.f32 %v2469_v56, %v2301_v20  ;;  %v2052_v23 = vpop.f32.mrb[35].mxu1 }
 0x8b7   : > { %v2316_v25 = vpack.c.bf16 %v2050_v36, %v2050_v36  ;;  %v2053_v9 = vadd.f32 %v2301_v20, %v2052_v23 }
 0x8b8   : > { %2115 = vst.msk [vmem:[%s658_s0 + $0x8] sm:$0xf] %vm2112_vm3, %v2318_v57  ;;  %v2319_v27 = vpack.c.bf16 %v2061_v58, %v2061_v58 }
 0x8b9   : > { %2113 = vst.msk [vmem:[%s658_s0] sm:$0xf] %vm2112_vm3, %v2316_v25  ;;  %v2317_v29 = vpack.c.bf16 %v2053_v9, %v2053_v9 }
 0x8ba   : > { %2116 = vst.msk [vmem:[%s658_s0 + $0xc] sm:$0xf] %vm2112_vm3, %v2319_v27 }
 0x8bb   : > { %2114 = vst.msk [vmem:[%s658_s0 + $0x4] sm:$0xf] %vm2112_vm3, %v2317_v29  ;;  %v2472_v11 = vpop.f32.mrb[36].mxu1 }
 0x8bc   : > { %v2074_v12 = vadd.f32 %v2472_v11, %v2301_v20  ;;  %v2065_v30 = vpop.f32.mrb[37].mxu1 }
 0x8bd   : > { %v2066_v37 = vadd.f32 %v2301_v20, %v2065_v30  ;;  %v2473_v33 = vpop.f32.mrb[38].mxu1 }
 0x8be   : > { %v2322_v35 = vpack.c.bf16 %v2074_v12, %v2074_v12  ;;  %v2077_v38 = vadd.f32 %v2473_v33, %v2301_v20  ;;  %v2068_v39 = vpop.f32.mrb[39].mxu1 }
 0x8bf   : > { %v2320_v15 = vpack.c.bf16 %v2066_v37, %v2066_v37  ;;  %v2069_v13 = vadd.f32 %v2301_v20, %v2068_v39 }
 0x8c0   : > { %2119 = vst.msk [vmem:[%s658_s0 + $0x18] sm:$0xf] %vm2112_vm3, %v2322_v35  ;;  %v2323_v40 = vpack.c.bf16 %v2077_v38, %v2077_v38 }
 0x8c1   : > { %2117 = vst.msk [vmem:[%s658_s0 + $0x10] sm:$0xf] %vm2112_vm3, %v2320_v15  ;;  %v2321_v41 = vpack.c.bf16 %v2069_v13, %v2069_v13 }
 0x8c2   : > { %2120 = vst.msk [vmem:[%s658_s0 + $0x1c] sm:$0xf] %vm2112_vm3, %v2323_v40 }
 0x8c3   : > { %2118 = vst.msk [vmem:[%s658_s0 + $0x14] sm:$0xf] %vm2112_vm3, %v2321_v41 }
 0x8c4 PF: > { %s31_s2 = sadd.s32 1, %s2758_s2  }
 0x8c5   : > { %p28_p4 = scmp.ge.s32.totalorder %s31_s2, 4  }
 0x8c7   :  { %30 = sbr.rel (!%p28_p4) target bundleno = 7 (0x7), region = 134 }

</bundles_post_ra>
